<compile_context>
chip_gen: v5e
topology: v5e:2x2
jax: 0.10.0
libtpu: 0.0.40
codegen_flags: <defaults>
</compile_context>

<pallas_src>
import math
import functools

import jax
import jax.numpy as jnp
from jax.experimental import pallas as pl
from jax.experimental.pallas import tpu as pltpu


# ----------------------------- helpers ---------------------------------------

def _layer_norm(x, gamma, beta, eps=1e-5):
    mu = jnp.mean(x, axis=-1, keepdims=True)
    var = jnp.mean((x - mu) ** 2, axis=-1, keepdims=True)
    return (x - mu) * jax.lax.rsqrt(var + eps) * gamma + beta


# ----------------------- anomaly-attention encoder layer ---------------------

def _anomaly_layer_kernel(H, fuse_norm, *refs):
    if fuse_norm:
        (x_ref, wq_ref, wk_ref, wv_ref, ws_ref, wo_ref,
         w1_ref, b1_ref, w2_ref, b2_ref,
         g1_ref, be1_ref, g2_ref, be2_ref, gn_ref, bn_ref,
         xo_ref, attn_ref, series_ref, prior_ref, sigma_ref, xn_ref) = refs
    else:
        (x_ref, wq_ref, wk_ref, wv_ref, ws_ref, wo_ref,
         w1_ref, b1_ref, w2_ref, b2_ref,
         g1_ref, be1_ref, g2_ref, be2_ref,
         xo_ref, attn_ref, series_ref, prior_ref, sigma_ref) = refs
        gn_ref = bn_ref = xn_ref = None

    x = x_ref[0]                                      # (Bt, L, D) f32
    Bt, L, D = x.shape
    dh = D // H
    scale = 1.0 / math.sqrt(dh)
    coef = 1.0 / math.sqrt(2.0 * math.pi)

    x2 = x.reshape(Bt * L, D)                         # major-dim merge
    xb = x2.astype(jnp.bfloat16)

    # Fused projections on the whole (Bt*L, D) slab; bf16 operands, f32 accumulate.
    q = jnp.dot(xb, wq_ref[...], preferred_element_type=jnp.float32)     # (Bt*L, D)
    k = jnp.dot(xb, wk_ref[...], preferred_element_type=jnp.float32)
    v = jnp.dot(xb, wv_ref[...], preferred_element_type=jnp.float32)
    sig = jnp.dot(xb, ws_ref[...], preferred_element_type=jnp.float32)   # (Bt*L, H)

    # sigma transform (AnomalyAttention): sigmoid(5*s)+1e-5 ; 3**s - 1   (kept f32)
    sig = jax.nn.sigmoid(sig * 5.0) + 1e-5
    sig = jnp.exp(sig * math.log(3.0)) - 1.0

    # (Bt, H, L) layout so the kernel writes sigma directly (no external swapaxes).
    sig_hl = jnp.stack([sig[b * L:(b + 1) * L, :].T for b in range(Bt)], axis=0)
    sigma_ref[0] = sig_hl

    # Gaussian prior: |i-j|^2 built in-kernel, reciprocals instead of (L,L) divides.
    rows = jax.lax.broadcasted_iota(jnp.int32, (L, L), 0)
    cols = jax.lax.broadcasted_iota(jnp.int32, (L, L), 1)
    diff = (rows - cols).astype(jnp.float32)
    dist2 = diff * diff                                                   # (L, L)
    inv_sig = pl.reciprocal(sig_hl, approx=True)                          # (Bt, H, L)
    inv_2s2 = 0.5 * inv_sig * inv_sig
    prior_ref[0] = (coef * inv_sig)[..., None] * jnp.exp(
        -dist2[None, None, :, :] * inv_2s2[..., None])                    # (Bt, H, L, L)

    # Head-batched attention: build (Bt*H, L, dh) bf16 operands (b-major, h-minor).
    qb = q.astype(jnp.bfloat16)
    kb = k.astype(jnp.bfloat16)
    vb = v.astype(jnp.bfloat16)

    def heads(t):
        return jnp.stack(
            [t[b * L:(b + 1) * L, h * dh:(h + 1) * dh]
             for b in range(Bt) for h in range(H)], axis=0)               # (Bt*H, L, dh)

    qh, kh, vh = heads(qb), heads(kb), heads(vb)

    sc = scale * jnp.einsum('bqd,bkd->bqk', qh, kh,
                            preferred_element_type=jnp.float32)           # (Bt*H, L, L)
    attn_ref[0] = sc.reshape(Bt, H, L, L)

    m = jnp.max(sc, axis=-1, keepdims=True)
    e = jnp.exp(sc - m)
    series = e * pl.reciprocal(jnp.sum(e, axis=-1, keepdims=True), approx=True)
    series_ref[0] = series.reshape(Bt, H, L, L)

    ctx = jnp.einsum('bqk,bkd->bqd', series.astype(jnp.bfloat16), vh,
                     preferred_element_type=jnp.float32)                  # (Bt*H, L, dh)

    # Output projection: accumulate per-head (L,dh)@(dh,D) against wo rows
    # (wo passed as (H, dh, D)); avoids any lane-axis concatenate of head outputs.
    wo_r = wo_ref[...]                                                    # (H, dh, D) bf16
    ctxb = ctx.astype(jnp.bfloat16)
    outs = []
    for b in range(Bt):
        acc = jnp.zeros((L, D), jnp.float32)
        for h in range(H):
            acc = acc + jnp.dot(ctxb[b * H + h], wo_r[h],
                                preferred_element_type=jnp.float32)
        outs.append(acc)
    new_x = jnp.concatenate(outs, axis=0)                                 # (Bt*L, D)

    # residual + norm1, k=1-conv FFN (relu), residual + norm2 — reductions kept f32.
    x1 = _layer_norm(x2 + new_x, g1_ref[...], be1_ref[...])
    y = jnp.dot(x1.astype(jnp.bfloat16), w1_ref[...],
                preferred_element_type=jnp.float32) + b1_ref[...]
    y = jnp.maximum(y, 0.0)
    y = jnp.dot(y.astype(jnp.bfloat16), w2_ref[...],
                preferred_element_type=jnp.float32) + b2_ref[...]
    x_out = _layer_norm(x1 + y, g2_ref[...], be2_ref[...])                # (Bt*L, D)
    xo_ref[0] = x_out.reshape(Bt, L, D)

    if fuse_norm:
        # Fused final encoder LayerNorm (only emitted for the last layer).
        xn_ref[0] = _layer_norm(x_out, gn_ref[...], bn_ref[...]).reshape(Bt, L, D)


def anomaly_layer(x, p, H, norm_params=None, bt=None):
    BR, B, L, D = x.shape
    dh = D // H
    d_ff = p['w1'].shape[1]
    if bt is None:
        bt = B
    assert B % bt == 0
    fuse_norm = norm_params is not None

    bf16 = jnp.bfloat16
    wq = p['wq'].astype(bf16)
    wk = p['wk'].astype(bf16)
    wv = p['wv'].astype(bf16)
    ws = p['ws'].astype(bf16)
    wo_r = p['wo'].reshape(H, dh, D).astype(bf16)     # per-head rows on a major axis
    w1 = p['w1'].astype(bf16)
    w2 = p['w2'].astype(bf16)

    def const(shape):
        return pl.BlockSpec(shape, lambda br, b: (0,) * len(shape))

    in_specs = [
        pl.BlockSpec((1, bt, L, D), lambda br, b: (br, b, 0, 0)),
        const((D, D)), const((D, D)), const((D, D)), const((D, H)),
        const((H, dh, D)),
        const((D, d_ff)), const((1, d_ff)), const((d_ff, D)), const((1, D)),
        const((1, D)), const((1, D)), const((1, D)), const((1, D)),
    ]
    inputs = [x, wq, wk, wv, ws, wo_r, w1, p['b1'], w2, p['b2'],
              p['g1'], p['be1'], p['g2'], p['be2']]
    if fuse_norm:
        in_specs += [const((1, D)), const((1, D))]
        inputs += [norm_params[0], norm_params[1]]

    out_specs = [
        pl.BlockSpec((1, bt, L, D), lambda br, b: (br, b, 0, 0)),
        pl.BlockSpec((1, bt, H, L, L), lambda br, b: (br, b, 0, 0, 0)),
        pl.BlockSpec((1, bt, H, L, L), lambda br, b: (br, b, 0, 0, 0)),
        pl.BlockSpec((1, bt, H, L, L), lambda br, b: (br, b, 0, 0, 0)),
        pl.BlockSpec((1, bt, H, L), lambda br, b: (br, b, 0, 0)),
    ]
    out_shape = [
        jax.ShapeDtypeStruct((BR, B, L, D), jnp.float32),
        jax.ShapeDtypeStruct((BR, B, H, L, L), jnp.float32),
        jax.ShapeDtypeStruct((BR, B, H, L, L), jnp.float32),
        jax.ShapeDtypeStruct((BR, B, H, L, L), jnp.float32),
        jax.ShapeDtypeStruct((BR, B, H, L), jnp.float32),
    ]
    if fuse_norm:
        out_specs.append(pl.BlockSpec((1, bt, L, D), lambda br, b: (br, b, 0, 0)))
        out_shape.append(jax.ShapeDtypeStruct((BR, B, L, D), jnp.float32))

    kern = functools.partial(_anomaly_layer_kernel, H, fuse_norm)
    res = pl.pallas_call(
        kern, grid=(BR, B // bt),
        in_specs=in_specs, out_specs=tuple(out_specs), out_shape=tuple(out_shape),
        compiler_params=pltpu.CompilerParams(
            dimension_semantics=("parallel", "parallel"),
            vmem_limit_bytes=64 * 1024 * 1024),
    )(*inputs)

    if fuse_norm:
        x_out, attn, series, prior, sigma, x_norm = res
        return x_out, attn, series, prior, sigma, x_norm
    x_out, attn, series, prior, sigma = res
    return x_out, attn, series, prior, sigma, None


# --------------------- cosine similarity (contrastive path) -------------------

def _cos_sim_kernel(f_ref, c_ref, o_ref):
    f = f_ref[0]                                      # (N, D)
    c = c_ref[0]                                      # (K, D)
    fn = f * jax.lax.rsqrt(jnp.sum(f * f, axis=-1, keepdims=True) + 1e-24)
    cn = c * jax.lax.rsqrt(jnp.sum(c * c, axis=-1, keepdims=True) + 1e-24)
    o_ref[0] = jnp.einsum('nd,kd->nk', fn, cn, preferred_element_type=jnp.float32)


def cosine_sim(feats, cfeats):
    BR, N, D = feats.shape
    _, K, _ = cfeats.shape
    return pl.pallas_call(
        _cos_sim_kernel, grid=(BR,),
        in_specs=[pl.BlockSpec((1, N, D), lambda br: (br, 0, 0)),
                  pl.BlockSpec((1, K, D), lambda br: (br, 0, 0))],
        out_specs=pl.BlockSpec((1, N, K), lambda br: (br, 0, 0)),
        out_shape=jax.ShapeDtypeStruct((BR, N, K), jnp.float32),
        compiler_params=pltpu.CompilerParams(
            dimension_semantics=("parallel",)),
    )(feats, cfeats)


# ------------------------------ Encoder forward --------------------------------

def encoder_forward(x, layer_params, norm_gamma, norm_beta, H,
                    attn_mask=None, noise=None, finch_normal=None, cluster_t=1.0,
                    batch_tile=None):
    # attn_mask / noise kept for signature parity; unused in this eval-mode layer.
    n_layers = len(layer_params)
    attn_list, series_list, prior_list, sigma_list = [], [], [], []
    finch_out = None
    x_norm = None
    for layer_i, p in enumerate(layer_params):
        is_last = layer_i == n_layers - 1
        norm_p = (norm_gamma, norm_beta) if is_last else None
        x, attn, series, prior, sigma, xn = anomaly_layer(
            x, p, H, norm_params=norm_p, bt=batch_tile)
        if is_last:
            x_norm = xn
        attn_list.append(attn)
        series_list.append(series)
        prior_list.append(prior)
        sigma_list.append(sigma)
        if layer_i == 2:
            if finch_normal is None:
                # TODO(synk): FINCH clustering + merge_tokens is an iterative CPU/numpy
                # nearest-neighbour agglomeration with no clean Pallas equivalent.
                finch_out = None
            else:
                BR, B, L, D = x.shape
                feats = x.reshape(BR, B * L, D)                    # pre-norm x, as in ref
                cfeats = jnp.stack(finch_normal['clustered_feats'], axis=0)
                sims = cosine_sim(feats, cfeats)                   # (BR, B*L, K)
                logits_lst, labels_lst = [], []
                for branch in range(3):
                    c = finch_normal['cluster_idx'][branch]        # (B*L,) int
                    sim = sims[branch]
                    K = sim.shape[1]
                    pos = jnp.take_along_axis(sim, c[:, None], axis=1)      # (B*L, 1)
                    jj = jnp.arange(K - 1, dtype=c.dtype)[None, :]
                    neg_idx = jj + (jj >= c[:, None]).astype(c.dtype)       # skip own col
                    neg = jnp.take_along_axis(sim, neg_idx, axis=1)         # (B*L, K-1)
                    logits = jnp.concatenate([pos, neg], axis=1) / cluster_t
                    labels = jnp.zeros((logits.shape[0],), dtype=jnp.int32)
                    logits_lst.append(logits)
                    labels_lst.append(labels)
                finch_out = {'logits': logits_lst, 'labels': labels_lst}

    x_t, x_c, x_o = x_norm[0], x_norm[1], x_norm[2]
    return (x_t, x_c, x_o), attn_list, series_list, prior_list, sigma_list, finch_out


# ------------------------------- param init ------------------------------------

def init_layer_params(key, D, H, d_ff):
    ks = jax.random.split(key, 7)
    s = 0.1
    return dict(
        wq=jax.random.normal(ks[0], (D, D), jnp.float32) * s,
        wk=jax.random.normal(ks[1], (D, D), jnp.float32) * s,
        wv=jax.random.normal(ks[2], (D, D), jnp.float32) * s,
        ws=jax.random.normal(ks[3], (D, H), jnp.float32) * s,
        wo=jax.random.normal(ks[4], (D, D), jnp.float32) * s,
        w1=jax.random.normal(ks[5], (D, d_ff), jnp.float32) * s,
        b1=jnp.zeros((1, d_ff), jnp.float32),
        w2=jax.random.normal(ks[6], (d_ff, D), jnp.float32) * s,
        b2=jnp.zeros((1, D), jnp.float32),
        g1=jnp.ones((1, D), jnp.float32),
        be1=jnp.zeros((1, D), jnp.float32),
        g2=jnp.ones((1, D), jnp.float32),
        be2=jnp.zeros((1, D), jnp.float32),
    )


if __name__ == "__main__":
    B, L, D, H, d_ff = 2, 8, 32, 4, 64
    n_layers, K = 3, 4

    key = jax.random.PRNGKey(0)
    kx, kp, kc, kidx = jax.random.split(key, 4)

    x = jax.random.normal(kx, (3, B, L, D), jnp.float32)          # stacked branches

    layer_keys = jax.random.split(kp, n_layers)
    layer_params = [init_layer_params(k, D, H, d_ff) for k in layer_keys]
    norm_gamma = jnp.ones((1, D), jnp.float32)
    norm_beta = jnp.zeros((1, D), jnp.float32)

    ck = jax.random.split(kc, 3)
    ik = jax.random.split(kidx, 3)
    finch_normal = {
        'clustered_feats': [jax.random.normal(ck[b], (K, D), jnp.float32)
                            for b in range(3)],
        'cluster_idx': [jax.random.randint(ik[b], (B * L,), 0, K, jnp.int32)
                        for b in range(3)],
    }

    out = encoder_forward(x, layer_params, norm_gamma, norm_beta, H,
                          finch_normal=finch_normal, cluster_t=1.0)
    jax.block_until_ready(out)
    print("KERNEL_OK")
</pallas_src>

<mosaic_0001>
module attributes {stable_mosaic.version = 11 : i64} {
  func.func @_anomaly_layer_kernel(%arg0: i32, %arg1: i32, %arg2: memref<1x2x8x32xf32, #tpu.memory_space<vmem>>, %arg3: memref<32x32xbf16, #tpu.memory_space<vmem>>, %arg4: memref<32x32xbf16, #tpu.memory_space<vmem>>, %arg5: memref<32x32xbf16, #tpu.memory_space<vmem>>, %arg6: memref<32x4xbf16, #tpu.memory_space<vmem>>, %arg7: memref<4x8x32xbf16, #tpu.memory_space<vmem>>, %arg8: memref<32x64xbf16, #tpu.memory_space<vmem>>, %arg9: memref<1x64xf32, #tpu.memory_space<vmem>>, %arg10: memref<64x32xbf16, #tpu.memory_space<vmem>>, %arg11: memref<1x32xf32, #tpu.memory_space<vmem>>, %arg12: memref<1x32xf32, #tpu.memory_space<vmem>>, %arg13: memref<1x32xf32, #tpu.memory_space<vmem>>, %arg14: memref<1x32xf32, #tpu.memory_space<vmem>>, %arg15: memref<1x32xf32, #tpu.memory_space<vmem>>, %arg16: memref<1x2x8x32xf32, #tpu.memory_space<vmem>>, %arg17: memref<1x2x4x8x8xf32, #tpu.memory_space<vmem>>, %arg18: memref<1x2x4x8x8xf32, #tpu.memory_space<vmem>>, %arg19: memref<1x2x4x8x8xf32, #tpu.memory_space<vmem>>, %arg20: memref<1x2x4x8xf32, #tpu.memory_space<vmem>>) attributes {dimension_semantics = [#tpu.dimension_semantics<parallel>, #tpu.dimension_semantics<parallel>], iteration_bounds = array<i64: 3, 1>, scalar_prefetch = 0 : i64, scratch_operands = 0 : i64, tpu.core_type = #tpu.core_type<tc>, window_params = [{transform_indices = @transform_0, window_bounds = array<i64: 1, 2, 8, 32>}, {pipeline_mode = #tpu.pipeline_mode<synchronous>, transform_indices = @transform_1, window_bounds = array<i64: 32, 32>}, {pipeline_mode = #tpu.pipeline_mode<synchronous>, transform_indices = @transform_2, window_bounds = array<i64: 32, 32>}, {pipeline_mode = #tpu.pipeline_mode<synchronous>, transform_indices = @transform_3, window_bounds = array<i64: 32, 32>}, {pipeline_mode = #tpu.pipeline_mode<synchronous>, transform_indices = @transform_4, window_bounds = array<i64: 32, 4>}, {pipeline_mode = #tpu.pipeline_mode<synchronous>, transform_indices = @transform_5, window_bounds = array<i64: 4, 8, 32>}, {pipeline_mode = #tpu.pipeline_mode<synchronous>, transform_indices = @transform_6, window_bounds = array<i64: 32, 64>}, {pipeline_mode = #tpu.pipeline_mode<synchronous>, transform_indices = @transform_7, window_bounds = array<i64: 1, 64>}, {pipeline_mode = #tpu.pipeline_mode<synchronous>, transform_indices = @transform_8, window_bounds = array<i64: 64, 32>}, {pipeline_mode = #tpu.pipeline_mode<synchronous>, transform_indices = @transform_9, window_bounds = array<i64: 1, 32>}, {pipeline_mode = #tpu.pipeline_mode<synchronous>, transform_indices = @transform_10, window_bounds = array<i64: 1, 32>}, {pipeline_mode = #tpu.pipeline_mode<synchronous>, transform_indices = @transform_11, window_bounds = array<i64: 1, 32>}, {pipeline_mode = #tpu.pipeline_mode<synchronous>, transform_indices = @transform_12, window_bounds = array<i64: 1, 32>}, {pipeline_mode = #tpu.pipeline_mode<synchronous>, transform_indices = @transform_13, window_bounds = array<i64: 1, 32>}, {transform_indices = @transform_14, window_bounds = array<i64: 1, 2, 8, 32>}, {transform_indices = @transform_15, window_bounds = array<i64: 1, 2, 4, 8, 8>}, {transform_indices = @transform_16, window_bounds = array<i64: 1, 2, 4, 8, 8>}, {transform_indices = @transform_17, window_bounds = array<i64: 1, 2, 4, 8, 8>}, {transform_indices = @transform_18, window_bounds = array<i64: 1, 2, 4, 8>}]} {
    %c0 = arith.constant 0 : index
    %c0_0 = arith.constant 0 : index
    %c0_1 = arith.constant 0 : index
    %c0_2 = arith.constant 0 : index
    %0 = vector.load %arg2[%c0, %c0_0, %c0_1, %c0_2] : memref<1x2x8x32xf32, #tpu.memory_space<vmem>>, vector<1x2x8x32xf32>
    %1 = vector.shape_cast %0 : vector<1x2x8x32xf32> to vector<2x8x32xf32>
    %2 = vector.shape_cast %1 : vector<2x8x32xf32> to vector<16x32xf32>
    %3 = arith.truncf %2 : vector<16x32xf32> to vector<16x32xbf16>
    %c0_3 = arith.constant 0 : index
    %c0_4 = arith.constant 0 : index
    %4 = vector.load %arg3[%c0_3, %c0_4] : memref<32x32xbf16, #tpu.memory_space<vmem>>, vector<32x32xbf16>
    %cst = arith.constant dense<0.000000e+00> : vector<16x32xf32>
    %5 = tpu.matmul %3, %4, %cst {dimension_numbers = #tpu.dot_dimension_numbers<[1], [0], [0], [1], [0, 0, 1, 1], [], []>} : vector<16x32xbf16>, vector<32x32xbf16>, vector<16x32xf32> -> vector<16x32xf32>
    %c0_5 = arith.constant 0 : index
    %c0_6 = arith.constant 0 : index
    %6 = vector.load %arg4[%c0_5, %c0_6] : memref<32x32xbf16, #tpu.memory_space<vmem>>, vector<32x32xbf16>
    %cst_7 = arith.constant dense<0.000000e+00> : vector<16x32xf32>
    %7 = tpu.matmul %3, %6, %cst_7 {dimension_numbers = #tpu.dot_dimension_numbers<[1], [0], [0], [1], [0, 0, 1, 1], [], []>} : vector<16x32xbf16>, vector<32x32xbf16>, vector<16x32xf32> -> vector<16x32xf32>
    %c0_8 = arith.constant 0 : index
    %c0_9 = arith.constant 0 : index
    %8 = vector.load %arg5[%c0_8, %c0_9] : memref<32x32xbf16, #tpu.memory_space<vmem>>, vector<32x32xbf16>
    %cst_10 = arith.constant dense<0.000000e+00> : vector<16x32xf32>
    %9 = tpu.matmul %3, %8, %cst_10 {dimension_numbers = #tpu.dot_dimension_numbers<[1], [0], [0], [1], [0, 0, 1, 1], [], []>} : vector<16x32xbf16>, vector<32x32xbf16>, vector<16x32xf32> -> vector<16x32xf32>
    %c0_11 = arith.constant 0 : index
    %c0_12 = arith.constant 0 : index
    %10 = vector.load %arg6[%c0_11, %c0_12] : memref<32x4xbf16, #tpu.memory_space<vmem>>, vector<32x4xbf16>
    %cst_13 = arith.constant dense<0.000000e+00> : vector<16x4xf32>
    %11 = tpu.matmul %3, %10, %cst_13 {dimension_numbers = #tpu.dot_dimension_numbers<[1], [0], [0], [1], [0, 0, 1, 1], [], []>} : vector<16x32xbf16>, vector<32x4xbf16>, vector<16x4xf32> -> vector<16x4xf32>
    %cst_14 = arith.constant 5.000000e+00 : f32
    %12 = vector.broadcast %cst_14 : f32 to vector<16x4xf32>
    %13 = arith.mulf %11, %12 : vector<16x4xf32>
    %14 = arith.negf %13 : vector<16x4xf32>
    %15 = math.exp %14 : vector<16x4xf32>
    %cst_15 = arith.constant 1.000000e+00 : f32
    %16 = vector.broadcast %cst_15 : f32 to vector<16x4xf32>
    %17 = arith.addf %16, %15 : vector<16x4xf32>
    %18 = arith.divf %16, %17 : vector<16x4xf32>
    %cst_16 = arith.constant 9.99999974E-6 : f32
    %19 = vector.broadcast %cst_16 : f32 to vector<16x4xf32>
    %20 = arith.addf %18, %19 : vector<16x4xf32>
    %cst_17 = arith.constant 1.09861231 : f32
    %21 = vector.broadcast %cst_17 : f32 to vector<16x4xf32>
    %22 = arith.mulf %20, %21 : vector<16x4xf32>
    %23 = math.exp %22 : vector<16x4xf32>
    %cst_18 = arith.constant 1.000000e+00 : f32
    %24 = vector.broadcast %cst_18 : f32 to vector<16x4xf32>
    %25 = arith.subf %23, %24 : vector<16x4xf32>
    %26 = vector.extract_strided_slice %25 {offsets = [0, 0], sizes = [8, 4], strides = [1, 1]} : vector<16x4xf32> to vector<8x4xf32>
    %27 = tpu.transpose %26, [1, 0] : vector<8x4xf32> -> vector<4x8xf32>
    %28 = vector.extract_strided_slice %25 {offsets = [8, 0], sizes = [8, 4], strides = [1, 1]} : vector<16x4xf32> to vector<8x4xf32>
    %29 = tpu.transpose %28, [1, 0] : vector<8x4xf32> -> vector<4x8xf32>
    %30 = vector.shape_cast %27 : vector<4x8xf32> to vector<1x4x8xf32>
    %31 = vector.shape_cast %29 : vector<4x8xf32> to vector<1x4x8xf32>
    %32 = tpu.concatenate %30, %31 in 0 : vector<1x4x8xf32>, vector<1x4x8xf32> -> vector<2x4x8xf32>
    %c0_19 = arith.constant 0 : index
    %c0_20 = arith.constant 0 : index
    %c0_21 = arith.constant 0 : index
    %c0_22 = arith.constant 0 : index
    %33 = vector.load %arg20[%c0_19, %c0_20, %c0_21, %c0_22] : memref<1x2x4x8xf32, #tpu.memory_space<vmem>>, vector<1x2x4x8xf32>
    %34 = vector.shape_cast %33 : vector<1x2x4x8xf32> to vector<2x4x8xf32>
    %35 = vector.shape_cast %32 : vector<2x4x8xf32> to vector<1x2x4x8xf32>
    tpu.vector_store %arg20[%c0_19, %c0_20, %c0_21, %c0_22], %35 {strides = array<i32>} : memref<1x2x4x8xf32, #tpu.memory_space<vmem>>, vector<1x2x4x8xf32>,
    %36 = tpu.iota {dimensions = array<i32: 0>} : vector<8x8xi32>
    %37 = tpu.iota {dimensions = array<i32: 1>} : vector<8x8xi32>
    %38 = arith.subi %36, %37 : vector<8x8xi32>
    %39 = arith.sitofp %38 : vector<8x8xi32> to vector<8x8xf32>
    %40 = arith.mulf %39, %39 : vector<8x8xf32>
    %41 = tpu.reciprocal %32 {approx = true} : vector<2x4x8xf32> -> vector<2x4x8xf32>
    %cst_23 = arith.constant 5.000000e-01 : f32
    %42 = vector.broadcast %cst_23 : f32 to vector<2x4x8xf32>
    %43 = arith.mulf %42, %41 : vector<2x4x8xf32>
    %44 = arith.mulf %43, %41 : vector<2x4x8xf32>
    %cst_24 = arith.constant 0.398942292 : f32
    %45 = vector.broadcast %cst_24 : f32 to vector<2x4x8xf32>
    %46 = arith.mulf %45, %41 : vector<2x4x8xf32>
    %47 = vector.shape_cast %46 : vector<2x4x8xf32> to vector<2x4x8x1xf32>
    %48 = vector.shape_cast %40 : vector<8x8xf32> to vector<1x1x8x8xf32>
    %cst_25 = arith.constant 0.000000e+00 : f32
    %49 = vector.broadcast %cst_25 : f32 to vector<1x1x8x8xf32>
    %50 = arith.subf %49, %48 : vector<1x1x8x8xf32>
    %51 = vector.shape_cast %44 : vector<2x4x8xf32> to vector<2x4x8x1xf32>
    %52 = vector.broadcast %50 : vector<1x1x8x8xf32> to vector<2x4x8x8xf32>
    %53 = vector.broadcast %51 : vector<2x4x8x1xf32> to vector<2x4x8x8xf32>
    %54 = arith.mulf %52, %53 : vector<2x4x8x8xf32>
    %55 = math.exp %54 : vector<2x4x8x8xf32>
    %56 = vector.broadcast %47 : vector<2x4x8x1xf32> to vector<2x4x8x8xf32>
    %57 = arith.mulf %56, %55 : vector<2x4x8x8xf32>
    %c0_26 = arith.constant 0 : index
    %c0_27 = arith.constant 0 : index
    %c0_28 = arith.constant 0 : index
    %c0_29 = arith.constant 0 : index
    %c0_30 = arith.constant 0 : index
    %58 = vector.load %arg19[%c0_26, %c0_27, %c0_28, %c0_29, %c0_30] : memref<1x2x4x8x8xf32, #tpu.memory_space<vmem>>, vector<1x2x4x8x8xf32>
    %59 = vector.shape_cast %58 : vector<1x2x4x8x8xf32> to vector<2x4x8x8xf32>
    %60 = vector.shape_cast %57 : vector<2x4x8x8xf32> to vector<1x2x4x8x8xf32>
    tpu.vector_store %arg19[%c0_26, %c0_27, %c0_28, %c0_29, %c0_30], %60 {strides = array<i32>} : memref<1x2x4x8x8xf32, #tpu.memory_space<vmem>>, vector<1x2x4x8x8xf32>,
    %61 = arith.truncf %5 : vector<16x32xf32> to vector<16x32xbf16>
    %62 = arith.truncf %7 : vector<16x32xf32> to vector<16x32xbf16>
    %63 = arith.truncf %9 : vector<16x32xf32> to vector<16x32xbf16>
    %64 = vector.extract_strided_slice %61 {offsets = [0, 0], sizes = [8, 8], strides = [1, 1]} : vector<16x32xbf16> to vector<8x8xbf16>
    %65 = vector.extract_strided_slice %61 {offsets = [0, 8], sizes = [8, 8], strides = [1, 1]} : vector<16x32xbf16> to vector<8x8xbf16>
    %66 = vector.extract_strided_slice %61 {offsets = [0, 16], sizes = [8, 8], strides = [1, 1]} : vector<16x32xbf16> to vector<8x8xbf16>
    %67 = vector.extract_strided_slice %61 {offsets = [0, 24], sizes = [8, 8], strides = [1, 1]} : vector<16x32xbf16> to vector<8x8xbf16>
    %68 = vector.extract_strided_slice %61 {offsets = [8, 0], sizes = [8, 8], strides = [1, 1]} : vector<16x32xbf16> to vector<8x8xbf16>
    %69 = vector.extract_strided_slice %61 {offsets = [8, 8], sizes = [8, 8], strides = [1, 1]} : vector<16x32xbf16> to vector<8x8xbf16>
    %70 = vector.extract_strided_slice %61 {offsets = [8, 16], sizes = [8, 8], strides = [1, 1]} : vector<16x32xbf16> to vector<8x8xbf16>
    %71 = vector.extract_strided_slice %61 {offsets = [8, 24], sizes = [8, 8], strides = [1, 1]} : vector<16x32xbf16> to vector<8x8xbf16>
    %72 = vector.shape_cast %64 : vector<8x8xbf16> to vector<1x8x8xbf16>
    %73 = vector.shape_cast %65 : vector<8x8xbf16> to vector<1x8x8xbf16>
    %74 = vector.shape_cast %66 : vector<8x8xbf16> to vector<1x8x8xbf16>
    %75 = vector.shape_cast %67 : vector<8x8xbf16> to vector<1x8x8xbf16>
    %76 = vector.shape_cast %68 : vector<8x8xbf16> to vector<1x8x8xbf16>
    %77 = vector.shape_cast %69 : vector<8x8xbf16> to vector<1x8x8xbf16>
    %78 = vector.shape_cast %70 : vector<8x8xbf16> to vector<1x8x8xbf16>
    %79 = vector.shape_cast %71 : vector<8x8xbf16> to vector<1x8x8xbf16>
    %80 = tpu.concatenate %72, %73, %74, %75, %76, %77, %78, %79 in 0 : vector<1x8x8xbf16>, vector<1x8x8xbf16>, vector<1x8x8xbf16>, vector<1x8x8xbf16>, vector<1x8x8xbf16>, vector<1x8x8xbf16>, vector<1x8x8xbf16>, vector<1x8x8xbf16> -> vector<8x8x8xbf16>
    %81 = vector.extract_strided_slice %62 {offsets = [0, 0], sizes = [8, 8], strides = [1, 1]} : vector<16x32xbf16> to vector<8x8xbf16>
    %82 = vector.extract_strided_slice %62 {offsets = [0, 8], sizes = [8, 8], strides = [1, 1]} : vector<16x32xbf16> to vector<8x8xbf16>
    %83 = vector.extract_strided_slice %62 {offsets = [0, 16], sizes = [8, 8], strides = [1, 1]} : vector<16x32xbf16> to vector<8x8xbf16>
    %84 = vector.extract_strided_slice %62 {offsets = [0, 24], sizes = [8, 8], strides = [1, 1]} : vector<16x32xbf16> to vector<8x8xbf16>
    %85 = vector.extract_strided_slice %62 {offsets = [8, 0], sizes = [8, 8], strides = [1, 1]} : vector<16x32xbf16> to vector<8x8xbf16>
    %86 = vector.extract_strided_slice %62 {offsets = [8, 8], sizes = [8, 8], strides = [1, 1]} : vector<16x32xbf16> to vector<8x8xbf16>
    %87 = vector.extract_strided_slice %62 {offsets = [8, 16], sizes = [8, 8], strides = [1, 1]} : vector<16x32xbf16> to vector<8x8xbf16>
    %88 = vector.extract_strided_slice %62 {offsets = [8, 24], sizes = [8, 8], strides = [1, 1]} : vector<16x32xbf16> to vector<8x8xbf16>
    %89 = vector.shape_cast %81 : vector<8x8xbf16> to vector<1x8x8xbf16>
    %90 = vector.shape_cast %82 : vector<8x8xbf16> to vector<1x8x8xbf16>
    %91 = vector.shape_cast %83 : vector<8x8xbf16> to vector<1x8x8xbf16>
    %92 = vector.shape_cast %84 : vector<8x8xbf16> to vector<1x8x8xbf16>
    %93 = vector.shape_cast %85 : vector<8x8xbf16> to vector<1x8x8xbf16>
    %94 = vector.shape_cast %86 : vector<8x8xbf16> to vector<1x8x8xbf16>
    %95 = vector.shape_cast %87 : vector<8x8xbf16> to vector<1x8x8xbf16>
    %96 = vector.shape_cast %88 : vector<8x8xbf16> to vector<1x8x8xbf16>
    %97 = tpu.concatenate %89, %90, %91, %92, %93, %94, %95, %96 in 0 : vector<1x8x8xbf16>, vector<1x8x8xbf16>, vector<1x8x8xbf16>, vector<1x8x8xbf16>, vector<1x8x8xbf16>, vector<1x8x8xbf16>, vector<1x8x8xbf16>, vector<1x8x8xbf16> -> vector<8x8x8xbf16>
    %98 = vector.extract_strided_slice %63 {offsets = [0, 0], sizes = [8, 8], strides = [1, 1]} : vector<16x32xbf16> to vector<8x8xbf16>
    %99 = vector.extract_strided_slice %63 {offsets = [0, 8], sizes = [8, 8], strides = [1, 1]} : vector<16x32xbf16> to vector<8x8xbf16>
    %100 = vector.extract_strided_slice %63 {offsets = [0, 16], sizes = [8, 8], strides = [1, 1]} : vector<16x32xbf16> to vector<8x8xbf16>
    %101 = vector.extract_strided_slice %63 {offsets = [0, 24], sizes = [8, 8], strides = [1, 1]} : vector<16x32xbf16> to vector<8x8xbf16>
    %102 = vector.extract_strided_slice %63 {offsets = [8, 0], sizes = [8, 8], strides = [1, 1]} : vector<16x32xbf16> to vector<8x8xbf16>
    %103 = vector.extract_strided_slice %63 {offsets = [8, 8], sizes = [8, 8], strides = [1, 1]} : vector<16x32xbf16> to vector<8x8xbf16>
    %104 = vector.extract_strided_slice %63 {offsets = [8, 16], sizes = [8, 8], strides = [1, 1]} : vector<16x32xbf16> to vector<8x8xbf16>
    %105 = vector.extract_strided_slice %63 {offsets = [8, 24], sizes = [8, 8], strides = [1, 1]} : vector<16x32xbf16> to vector<8x8xbf16>
    %106 = vector.shape_cast %98 : vector<8x8xbf16> to vector<1x8x8xbf16>
    %107 = vector.shape_cast %99 : vector<8x8xbf16> to vector<1x8x8xbf16>
    %108 = vector.shape_cast %100 : vector<8x8xbf16> to vector<1x8x8xbf16>
    %109 = vector.shape_cast %101 : vector<8x8xbf16> to vector<1x8x8xbf16>
    %110 = vector.shape_cast %102 : vector<8x8xbf16> to vector<1x8x8xbf16>
    %111 = vector.shape_cast %103 : vector<8x8xbf16> to vector<1x8x8xbf16>
    %112 = vector.shape_cast %104 : vector<8x8xbf16> to vector<1x8x8xbf16>
    %113 = vector.shape_cast %105 : vector<8x8xbf16> to vector<1x8x8xbf16>
    %114 = tpu.concatenate %106, %107, %108, %109, %110, %111, %112, %113 in 0 : vector<1x8x8xbf16>, vector<1x8x8xbf16>, vector<1x8x8xbf16>, vector<1x8x8xbf16>, vector<1x8x8xbf16>, vector<1x8x8xbf16>, vector<1x8x8xbf16>, vector<1x8x8xbf16> -> vector<8x8x8xbf16>
    "tpu.trace_start"() <{level = 10 : i32, message = "bqd,bkd->bqk"}> : () -> ()
    %cst_31 = arith.constant dense<0.000000e+00> : vector<8x8x8xf32>
    %115 = tpu.matmul %80, %97, %cst_31 {dimension_numbers = #tpu.dot_dimension_numbers<[2], [2], [1], [1], [0, 0, 0, 1, 1, 1], [0], [0]>} : vector<8x8x8xbf16>, vector<8x8x8xbf16>, vector<8x8x8xf32> -> vector<8x8x8xf32>
    "tpu.trace_stop"() : () -> ()
    %cst_32 = arith.constant 0.353553385 : f32
    %116 = vector.broadcast %cst_32 : f32 to vector<8x8x8xf32>
    %117 = arith.mulf %116, %115 : vector<8x8x8xf32>
    %118 = vector.shape_cast %117 : vector<8x8x8xf32> to vector<2x4x8x8xf32>
    %c0_33 = arith.constant 0 : index
    %c0_34 = arith.constant 0 : index
    %c0_35 = arith.constant 0 : index
    %c0_36 = arith.constant 0 : index
    %c0_37 = arith.constant 0 : index
    %119 = vector.load %arg17[%c0_33, %c0_34, %c0_35, %c0_36, %c0_37] : memref<1x2x4x8x8xf32, #tpu.memory_space<vmem>>, vector<1x2x4x8x8xf32>
    %120 = vector.shape_cast %119 : vector<1x2x4x8x8xf32> to vector<2x4x8x8xf32>
    %121 = vector.shape_cast %118 : vector<2x4x8x8xf32> to vector<1x2x4x8x8xf32>
    tpu.vector_store %arg17[%c0_33, %c0_34, %c0_35, %c0_36, %c0_37], %121 {strides = array<i32>} : memref<1x2x4x8x8xf32, #tpu.memory_space<vmem>>, vector<1x2x4x8x8xf32>,
    %cst_38 = arith.constant dense<0xFF800000> : vector<8x8xf32>
    %122 = vector.multi_reduction <maximumf>, %117, %cst_38 [2] : vector<8x8x8xf32> to vector<8x8xf32>
    %123 = vector.shape_cast %122 : vector<8x8xf32> to vector<8x8x1xf32>
    %124 = vector.broadcast %123 : vector<8x8x1xf32> to vector<8x8x8xf32>
    %125 = arith.subf %117, %124 : vector<8x8x8xf32>
    %126 = math.exp %125 : vector<8x8x8xf32>
    %cst_39 = arith.constant dense<0.000000e+00> : vector<8x8xf32>
    %127 = vector.multi_reduction <add>, %126, %cst_39 [2] : vector<8x8x8xf32> to vector<8x8xf32>
    %128 = vector.shape_cast %127 : vector<8x8xf32> to vector<8x8x1xf32>
    %129 = tpu.reciprocal %128 {approx = true} : vector<8x8x1xf32> -> vector<8x8x1xf32>
    %130 = vector.broadcast %129 : vector<8x8x1xf32> to vector<8x8x8xf32>
    %131 = arith.mulf %126, %130 : vector<8x8x8xf32>
    %132 = vector.shape_cast %131 : vector<8x8x8xf32> to vector<2x4x8x8xf32>
    %c0_40 = arith.constant 0 : index
    %c0_41 = arith.constant 0 : index
    %c0_42 = arith.constant 0 : index
    %c0_43 = arith.constant 0 : index
    %c0_44 = arith.constant 0 : index
    %133 = vector.load %arg18[%c0_40, %c0_41, %c0_42, %c0_43, %c0_44] : memref<1x2x4x8x8xf32, #tpu.memory_space<vmem>>, vector<1x2x4x8x8xf32>
    %134 = vector.shape_cast %133 : vector<1x2x4x8x8xf32> to vector<2x4x8x8xf32>
    %135 = vector.shape_cast %132 : vector<2x4x8x8xf32> to vector<1x2x4x8x8xf32>
    tpu.vector_store %arg18[%c0_40, %c0_41, %c0_42, %c0_43, %c0_44], %135 {strides = array<i32>} : memref<1x2x4x8x8xf32, #tpu.memory_space<vmem>>, vector<1x2x4x8x8xf32>,
    %136 = arith.truncf %131 : vector<8x8x8xf32> to vector<8x8x8xbf16>
    "tpu.trace_start"() <{level = 10 : i32, message = "bqk,bkd->bqd"}> : () -> ()
    %cst_45 = arith.constant dense<0.000000e+00> : vector<8x8x8xf32>
    %137 = tpu.matmul %136, %114, %cst_45 {dimension_numbers = #tpu.dot_dimension_numbers<[2], [1], [1], [2], [0, 0, 0, 1, 1, 2], [0], [0]>} : vector<8x8x8xbf16>, vector<8x8x8xbf16>, vector<8x8x8xf32> -> vector<8x8x8xf32>
    "tpu.trace_stop"() : () -> ()
    %c0_46 = arith.constant 0 : index
    %c0_47 = arith.constant 0 : index
    %c0_48 = arith.constant 0 : index
    %138 = vector.load %arg7[%c0_46, %c0_47, %c0_48] : memref<4x8x32xbf16, #tpu.memory_space<vmem>>, vector<4x8x32xbf16>
    %139 = arith.truncf %137 : vector<8x8x8xf32> to vector<8x8x8xbf16>
    %cst_49 = arith.constant 0.000000e+00 : f32
    %140 = vector.broadcast %cst_49 : f32 to vector<8x32xf32>
    %141 = vector.extract_strided_slice %139 {offsets = [0, 0, 0], sizes = [1, 8, 8], strides = [1, 1, 1]} : vector<8x8x8xbf16> to vector<1x8x8xbf16>
    %142 = vector.shape_cast %141 : vector<1x8x8xbf16> to vector<8x8xbf16>
    %143 = vector.extract_strided_slice %138 {offsets = [0, 0, 0], sizes = [1, 8, 32], strides = [1, 1, 1]} : vector<4x8x32xbf16> to vector<1x8x32xbf16>
    %144 = vector.shape_cast %143 : vector<1x8x32xbf16> to vector<8x32xbf16>
    %cst_50 = arith.constant dense<0.000000e+00> : vector<8x32xf32>
    %145 = tpu.matmul %142, %144, %cst_50 {dimension_numbers = #tpu.dot_dimension_numbers<[1], [0], [0], [1], [0, 0, 1, 1], [], []>} : vector<8x8xbf16>, vector<8x32xbf16>, vector<8x32xf32> -> vector<8x32xf32>
    %146 = arith.addf %140, %145 : vector<8x32xf32>
    %147 = vector.extract_strided_slice %139 {offsets = [1, 0, 0], sizes = [1, 8, 8], strides = [1, 1, 1]} : vector<8x8x8xbf16> to vector<1x8x8xbf16>
    %148 = vector.shape_cast %147 : vector<1x8x8xbf16> to vector<8x8xbf16>
    %149 = vector.extract_strided_slice %138 {offsets = [1, 0, 0], sizes = [1, 8, 32], strides = [1, 1, 1]} : vector<4x8x32xbf16> to vector<1x8x32xbf16>
    %150 = vector.shape_cast %149 : vector<1x8x32xbf16> to vector<8x32xbf16>
    %cst_51 = arith.constant dense<0.000000e+00> : vector<8x32xf32>
    %151 = tpu.matmul %148, %150, %cst_51 {dimension_numbers = #tpu.dot_dimension_numbers<[1], [0], [0], [1], [0, 0, 1, 1], [], []>} : vector<8x8xbf16>, vector<8x32xbf16>, vector<8x32xf32> -> vector<8x32xf32>
    %152 = arith.addf %146, %151 : vector<8x32xf32>
    %153 = vector.extract_strided_slice %139 {offsets = [2, 0, 0], sizes = [1, 8, 8], strides = [1, 1, 1]} : vector<8x8x8xbf16> to vector<1x8x8xbf16>
    %154 = vector.shape_cast %153 : vector<1x8x8xbf16> to vector<8x8xbf16>
    %155 = vector.extract_strided_slice %138 {offsets = [2, 0, 0], sizes = [1, 8, 32], strides = [1, 1, 1]} : vector<4x8x32xbf16> to vector<1x8x32xbf16>
    %156 = vector.shape_cast %155 : vector<1x8x32xbf16> to vector<8x32xbf16>
    %cst_52 = arith.constant dense<0.000000e+00> : vector<8x32xf32>
    %157 = tpu.matmul %154, %156, %cst_52 {dimension_numbers = #tpu.dot_dimension_numbers<[1], [0], [0], [1], [0, 0, 1, 1], [], []>} : vector<8x8xbf16>, vector<8x32xbf16>, vector<8x32xf32> -> vector<8x32xf32>
    %158 = arith.addf %152, %157 : vector<8x32xf32>
    %159 = vector.extract_strided_slice %139 {offsets = [3, 0, 0], sizes = [1, 8, 8], strides = [1, 1, 1]} : vector<8x8x8xbf16> to vector<1x8x8xbf16>
    %160 = vector.shape_cast %159 : vector<1x8x8xbf16> to vector<8x8xbf16>
    %161 = vector.extract_strided_slice %138 {offsets = [3, 0, 0], sizes = [1, 8, 32], strides = [1, 1, 1]} : vector<4x8x32xbf16> to vector<1x8x32xbf16>
    %162 = vector.shape_cast %161 : vector<1x8x32xbf16> to vector<8x32xbf16>
    %cst_53 = arith.constant dense<0.000000e+00> : vector<8x32xf32>
    %163 = tpu.matmul %160, %162, %cst_53 {dimension_numbers = #tpu.dot_dimension_numbers<[1], [0], [0], [1], [0, 0, 1, 1], [], []>} : vector<8x8xbf16>, vector<8x32xbf16>, vector<8x32xf32> -> vector<8x32xf32>
    %164 = arith.addf %158, %163 : vector<8x32xf32>
    %cst_54 = arith.constant 0.000000e+00 : f32
    %165 = vector.broadcast %cst_54 : f32 to vector<8x32xf32>
    %166 = vector.extract_strided_slice %139 {offsets = [4, 0, 0], sizes = [1, 8, 8], strides = [1, 1, 1]} : vector<8x8x8xbf16> to vector<1x8x8xbf16>
    %167 = vector.shape_cast %166 : vector<1x8x8xbf16> to vector<8x8xbf16>
    %168 = vector.extract_strided_slice %138 {offsets = [0, 0, 0], sizes = [1, 8, 32], strides = [1, 1, 1]} : vector<4x8x32xbf16> to vector<1x8x32xbf16>
    %169 = vector.shape_cast %168 : vector<1x8x32xbf16> to vector<8x32xbf16>
    %cst_55 = arith.constant dense<0.000000e+00> : vector<8x32xf32>
    %170 = tpu.matmul %167, %169, %cst_55 {dimension_numbers = #tpu.dot_dimension_numbers<[1], [0], [0], [1], [0, 0, 1, 1], [], []>} : vector<8x8xbf16>, vector<8x32xbf16>, vector<8x32xf32> -> vector<8x32xf32>
    %171 = arith.addf %165, %170 : vector<8x32xf32>
    %172 = vector.extract_strided_slice %139 {offsets = [5, 0, 0], sizes = [1, 8, 8], strides = [1, 1, 1]} : vector<8x8x8xbf16> to vector<1x8x8xbf16>
    %173 = vector.shape_cast %172 : vector<1x8x8xbf16> to vector<8x8xbf16>
    %174 = vector.extract_strided_slice %138 {offsets = [1, 0, 0], sizes = [1, 8, 32], strides = [1, 1, 1]} : vector<4x8x32xbf16> to vector<1x8x32xbf16>
    %175 = vector.shape_cast %174 : vector<1x8x32xbf16> to vector<8x32xbf16>
    %cst_56 = arith.constant dense<0.000000e+00> : vector<8x32xf32>
    %176 = tpu.matmul %173, %175, %cst_56 {dimension_numbers = #tpu.dot_dimension_numbers<[1], [0], [0], [1], [0, 0, 1, 1], [], []>} : vector<8x8xbf16>, vector<8x32xbf16>, vector<8x32xf32> -> vector<8x32xf32>
    %177 = arith.addf %171, %176 : vector<8x32xf32>
    %178 = vector.extract_strided_slice %139 {offsets = [6, 0, 0], sizes = [1, 8, 8], strides = [1, 1, 1]} : vector<8x8x8xbf16> to vector<1x8x8xbf16>
    %179 = vector.shape_cast %178 : vector<1x8x8xbf16> to vector<8x8xbf16>
    %180 = vector.extract_strided_slice %138 {offsets = [2, 0, 0], sizes = [1, 8, 32], strides = [1, 1, 1]} : vector<4x8x32xbf16> to vector<1x8x32xbf16>
    %181 = vector.shape_cast %180 : vector<1x8x32xbf16> to vector<8x32xbf16>
    %cst_57 = arith.constant dense<0.000000e+00> : vector<8x32xf32>
    %182 = tpu.matmul %179, %181, %cst_57 {dimension_numbers = #tpu.dot_dimension_numbers<[1], [0], [0], [1], [0, 0, 1, 1], [], []>} : vector<8x8xbf16>, vector<8x32xbf16>, vector<8x32xf32> -> vector<8x32xf32>
    %183 = arith.addf %177, %182 : vector<8x32xf32>
    %184 = vector.extract_strided_slice %139 {offsets = [7, 0, 0], sizes = [1, 8, 8], strides = [1, 1, 1]} : vector<8x8x8xbf16> to vector<1x8x8xbf16>
    %185 = vector.shape_cast %184 : vector<1x8x8xbf16> to vector<8x8xbf16>
    %186 = vector.extract_strided_slice %138 {offsets = [3, 0, 0], sizes = [1, 8, 32], strides = [1, 1, 1]} : vector<4x8x32xbf16> to vector<1x8x32xbf16>
    %187 = vector.shape_cast %186 : vector<1x8x32xbf16> to vector<8x32xbf16>
    %cst_58 = arith.constant dense<0.000000e+00> : vector<8x32xf32>
    %188 = tpu.matmul %185, %187, %cst_58 {dimension_numbers = #tpu.dot_dimension_numbers<[1], [0], [0], [1], [0, 0, 1, 1], [], []>} : vector<8x8xbf16>, vector<8x32xbf16>, vector<8x32xf32> -> vector<8x32xf32>
    %189 = arith.addf %183, %188 : vector<8x32xf32>
    %190 = tpu.concatenate %164, %189 in 0 : vector<8x32xf32>, vector<8x32xf32> -> vector<16x32xf32>
    %191 = arith.addf %2, %190 : vector<16x32xf32>
    %c0_59 = arith.constant 0 : index
    %c0_60 = arith.constant 0 : index
    %192 = vector.load %arg12[%c0_59, %c0_60] : memref<1x32xf32, #tpu.memory_space<vmem>>, vector<1x32xf32>
    %c0_61 = arith.constant 0 : index
    %c0_62 = arith.constant 0 : index
    %193 = vector.load %arg13[%c0_61, %c0_62] : memref<1x32xf32, #tpu.memory_space<vmem>>, vector<1x32xf32>
    %cst_63 = arith.constant dense<0.000000e+00> : vector<16xf32>
    %194 = vector.multi_reduction <add>, %191, %cst_63 [1] : vector<16x32xf32> to vector<16xf32>
    %195 = vector.shape_cast %194 : vector<16xf32> to vector<16x1xf32>
    %cst_64 = arith.constant 3.200000e+01 : f32
    %196 = vector.broadcast %cst_64 : f32 to vector<16x1xf32>
    %197 = arith.divf %195, %196 : vector<16x1xf32>
    %198 = vector.broadcast %197 : vector<16x1xf32> to vector<16x32xf32>
    %199 = arith.subf %191, %198 : vector<16x32xf32>
    %200 = arith.mulf %199, %199 : vector<16x32xf32>
    %cst_65 = arith.constant dense<0.000000e+00> : vector<16xf32>
    %201 = vector.multi_reduction <add>, %200, %cst_65 [1] : vector<16x32xf32> to vector<16xf32>
    %202 = vector.shape_cast %201 : vector<16xf32> to vector<16x1xf32>
    %cst_66 = arith.constant 3.200000e+01 : f32
    %203 = vector.broadcast %cst_66 : f32 to vector<16x1xf32>
    %204 = arith.divf %202, %203 : vector<16x1xf32>
    %205 = vector.broadcast %197 : vector<16x1xf32> to vector<16x32xf32>
    %206 = arith.subf %191, %205 : vector<16x32xf32>
    %cst_67 = arith.constant 9.99999974E-6 : f32
    %207 = vector.broadcast %cst_67 : f32 to vector<16x1xf32>
    %208 = arith.addf %204, %207 : vector<16x1xf32>
    %209 = math.rsqrt %208 : vector<16x1xf32>
    %210 = vector.broadcast %209 : vector<16x1xf32> to vector<16x32xf32>
    %211 = arith.mulf %206, %210 : vector<16x32xf32>
    %212 = vector.broadcast %192 : vector<1x32xf32> to vector<16x32xf32>
    %213 = arith.mulf %211, %212 : vector<16x32xf32>
    %214 = vector.broadcast %193 : vector<1x32xf32> to vector<16x32xf32>
    %215 = arith.addf %213, %214 : vector<16x32xf32>
    %216 = arith.truncf %215 : vector<16x32xf32> to vector<16x32xbf16>
    %c0_68 = arith.constant 0 : index
    %c0_69 = arith.constant 0 : index
    %217 = vector.load %arg8[%c0_68, %c0_69] : memref<32x64xbf16, #tpu.memory_space<vmem>>, vector<32x64xbf16>
    %cst_70 = arith.constant dense<0.000000e+00> : vector<16x64xf32>
    %218 = tpu.matmul %216, %217, %cst_70 {dimension_numbers = #tpu.dot_dimension_numbers<[1], [0], [0], [1], [0, 0, 1, 1], [], []>} : vector<16x32xbf16>, vector<32x64xbf16>, vector<16x64xf32> -> vector<16x64xf32>
    %c0_71 = arith.constant 0 : index
    %c0_72 = arith.constant 0 : index
    %219 = vector.load %arg9[%c0_71, %c0_72] : memref<1x64xf32, #tpu.memory_space<vmem>>, vector<1x64xf32>
    %220 = vector.broadcast %219 : vector<1x64xf32> to vector<16x64xf32>
    %221 = arith.addf %218, %220 : vector<16x64xf32>
    %cst_73 = arith.constant 0.000000e+00 : f32
    %222 = vector.broadcast %cst_73 : f32 to vector<16x64xf32>
    %223 = arith.maximumf %221, %222 : vector<16x64xf32>
    %224 = arith.truncf %223 : vector<16x64xf32> to vector<16x64xbf16>
    %c0_74 = arith.constant 0 : index
    %c0_75 = arith.constant 0 : index
    %225 = vector.load %arg10[%c0_74, %c0_75] : memref<64x32xbf16, #tpu.memory_space<vmem>>, vector<64x32xbf16>
    %cst_76 = arith.constant dense<0.000000e+00> : vector<16x32xf32>
    %226 = tpu.matmul %224, %225, %cst_76 {dimension_numbers = #tpu.dot_dimension_numbers<[1], [0], [0], [1], [0, 0, 1, 1], [], []>} : vector<16x64xbf16>, vector<64x32xbf16>, vector<16x32xf32> -> vector<16x32xf32>
    %c0_77 = arith.constant 0 : index
    %c0_78 = arith.constant 0 : index
    %227 = vector.load %arg11[%c0_77, %c0_78] : memref<1x32xf32, #tpu.memory_space<vmem>>, vector<1x32xf32>
    %228 = vector.broadcast %227 : vector<1x32xf32> to vector<16x32xf32>
    %229 = arith.addf %226, %228 : vector<16x32xf32>
    %230 = arith.addf %215, %229 : vector<16x32xf32>
    %c0_79 = arith.constant 0 : index
    %c0_80 = arith.constant 0 : index
    %231 = vector.load %arg14[%c0_79, %c0_80] : memref<1x32xf32, #tpu.memory_space<vmem>>, vector<1x32xf32>
    %c0_81 = arith.constant 0 : index
    %c0_82 = arith.constant 0 : index
    %232 = vector.load %arg15[%c0_81, %c0_82] : memref<1x32xf32, #tpu.memory_space<vmem>>, vector<1x32xf32>
    %cst_83 = arith.constant dense<0.000000e+00> : vector<16xf32>
    %233 = vector.multi_reduction <add>, %230, %cst_83 [1] : vector<16x32xf32> to vector<16xf32>
    %234 = vector.shape_cast %233 : vector<16xf32> to vector<16x1xf32>
    %cst_84 = arith.constant 3.200000e+01 : f32
    %235 = vector.broadcast %cst_84 : f32 to vector<16x1xf32>
    %236 = arith.divf %234, %235 : vector<16x1xf32>
    %237 = vector.broadcast %236 : vector<16x1xf32> to vector<16x32xf32>
    %238 = arith.subf %230, %237 : vector<16x32xf32>
    %239 = arith.mulf %238, %238 : vector<16x32xf32>
    %cst_85 = arith.constant dense<0.000000e+00> : vector<16xf32>
    %240 = vector.multi_reduction <add>, %239, %cst_85 [1] : vector<16x32xf32> to vector<16xf32>
    %241 = vector.shape_cast %240 : vector<16xf32> to vector<16x1xf32>
    %cst_86 = arith.constant 3.200000e+01 : f32
    %242 = vector.broadcast %cst_86 : f32 to vector<16x1xf32>
    %243 = arith.divf %241, %242 : vector<16x1xf32>
    %244 = vector.broadcast %236 : vector<16x1xf32> to vector<16x32xf32>
    %245 = arith.subf %230, %244 : vector<16x32xf32>
    %cst_87 = arith.constant 9.99999974E-6 : f32
    %246 = vector.broadcast %cst_87 : f32 to vector<16x1xf32>
    %247 = arith.addf %243, %246 : vector<16x1xf32>
    %248 = math.rsqrt %247 : vector<16x1xf32>
    %249 = vector.broadcast %248 : vector<16x1xf32> to vector<16x32xf32>
    %250 = arith.mulf %245, %249 : vector<16x32xf32>
    %251 = vector.broadcast %231 : vector<1x32xf32> to vector<16x32xf32>
    %252 = arith.mulf %250, %251 : vector<16x32xf32>
    %253 = vector.broadcast %232 : vector<1x32xf32> to vector<16x32xf32>
    %254 = arith.addf %252, %253 : vector<16x32xf32>
    %255 = vector.shape_cast %254 : vector<16x32xf32> to vector<2x8x32xf32>
    %c0_88 = arith.constant 0 : index
    %c0_89 = arith.constant 0 : index
    %c0_90 = arith.constant 0 : index
    %c0_91 = arith.constant 0 : index
    %256 = vector.load %arg16[%c0_88, %c0_89, %c0_90, %c0_91] : memref<1x2x8x32xf32, #tpu.memory_space<vmem>>, vector<1x2x8x32xf32>
    %257 = vector.shape_cast %256 : vector<1x2x8x32xf32> to vector<2x8x32xf32>
    %258 = vector.shape_cast %255 : vector<2x8x32xf32> to vector<1x2x8x32xf32>
    tpu.vector_store %arg16[%c0_88, %c0_89, %c0_90, %c0_91], %258 {strides = array<i32>} : memref<1x2x8x32xf32, #tpu.memory_space<vmem>>, vector<1x2x8x32xf32>,
    return
  }
  func.func @transform_0(%arg0: i32, %arg1: i32) -> (i32, i32, i32, i32) {
    %c0_i32 = arith.constant 0 : i32
    %c0_i32_0 = arith.constant 0 : i32
    %c0_i32_1 = arith.constant 0 : i32
    return %arg0, %arg1, %c0_i32, %c0_i32_0 : i32, i32, i32, i32
  }
  func.func @transform_1(%arg0: i32, %arg1: i32) -> (i32, i32) {
    %c0_i32 = arith.constant 0 : i32
    %c0_i32_0 = arith.constant 0 : i32
    %c0_i32_1 = arith.constant 0 : i32
    return %c0_i32, %c0_i32_0 : i32, i32
  }
  func.func @transform_2(%arg0: i32, %arg1: i32) -> (i32, i32) {
    %c0_i32 = arith.constant 0 : i32
    %c0_i32_0 = arith.constant 0 : i32
    %c0_i32_1 = arith.constant 0 : i32
    return %c0_i32, %c0_i32_0 : i32, i32
  }
  func.func @transform_3(%arg0: i32, %arg1: i32) -> (i32, i32) {
    %c0_i32 = arith.constant 0 : i32
    %c0_i32_0 = arith.constant 0 : i32
    %c0_i32_1 = arith.constant 0 : i32
    return %c0_i32, %c0_i32_0 : i32, i32
  }
  func.func @transform_4(%arg0: i32, %arg1: i32) -> (i32, i32) {
    %c0_i32 = arith.constant 0 : i32
    %c0_i32_0 = arith.constant 0 : i32
    %c0_i32_1 = arith.constant 0 : i32
    return %c0_i32, %c0_i32_0 : i32, i32
  }
  func.func @transform_5(%arg0: i32, %arg1: i32) -> (i32, i32, i32) {
    %c0_i32 = arith.constant 0 : i32
    %c0_i32_0 = arith.constant 0 : i32
    %c0_i32_1 = arith.constant 0 : i32
    %c0_i32_2 = arith.constant 0 : i32
    return %c0_i32, %c0_i32_0, %c0_i32_1 : i32, i32, i32
  }
  func.func @transform_6(%arg0: i32, %arg1: i32) -> (i32, i32) {
    %c0_i32 = arith.constant 0 : i32
    %c0_i32_0 = arith.constant 0 : i32
    %c0_i32_1 = arith.constant 0 : i32
    return %c0_i32, %c0_i32_0 : i32, i32
  }
  func.func @transform_7(%arg0: i32, %arg1: i32) -> (i32, i32) {
    %c0_i32 = arith.constant 0 : i32
    %c0_i32_0 = arith.constant 0 : i32
    %c0_i32_1 = arith.constant 0 : i32
    return %c0_i32, %c0_i32_0 : i32, i32
  }
  func.func @transform_8(%arg0: i32, %arg1: i32) -> (i32, i32) {
    %c0_i32 = arith.constant 0 : i32
    %c0_i32_0 = arith.constant 0 : i32
    %c0_i32_1 = arith.constant 0 : i32
    return %c0_i32, %c0_i32_0 : i32, i32
  }
  func.func @transform_9(%arg0: i32, %arg1: i32) -> (i32, i32) {
    %c0_i32 = arith.constant 0 : i32
    %c0_i32_0 = arith.constant 0 : i32
    %c0_i32_1 = arith.constant 0 : i32
    return %c0_i32, %c0_i32_0 : i32, i32
  }
  func.func @transform_10(%arg0: i32, %arg1: i32) -> (i32, i32) {
    %c0_i32 = arith.constant 0 : i32
    %c0_i32_0 = arith.constant 0 : i32
    %c0_i32_1 = arith.constant 0 : i32
    return %c0_i32, %c0_i32_0 : i32, i32
  }
  func.func @transform_11(%arg0: i32, %arg1: i32) -> (i32, i32) {
    %c0_i32 = arith.constant 0 : i32
    %c0_i32_0 = arith.constant 0 : i32
    %c0_i32_1 = arith.constant 0 : i32
    return %c0_i32, %c0_i32_0 : i32, i32
  }
  func.func @transform_12(%arg0: i32, %arg1: i32) -> (i32, i32) {
    %c0_i32 = arith.constant 0 : i32
    %c0_i32_0 = arith.constant 0 : i32
    %c0_i32_1 = arith.constant 0 : i32
    return %c0_i32, %c0_i32_0 : i32, i32
  }
  func.func @transform_13(%arg0: i32, %arg1: i32) -> (i32, i32) {
    %c0_i32 = arith.constant 0 : i32
    %c0_i32_0 = arith.constant 0 : i32
    %c0_i32_1 = arith.constant 0 : i32
    return %c0_i32, %c0_i32_0 : i32, i32
  }
  func.func @transform_14(%arg0: i32, %arg1: i32) -> (i32, i32, i32, i32) {
    %c0_i32 = arith.constant 0 : i32
    %c0_i32_0 = arith.constant 0 : i32
    %c0_i32_1 = arith.constant 0 : i32
    return %arg0, %arg1, %c0_i32, %c0_i32_0 : i32, i32, i32, i32
  }
  func.func @transform_15(%arg0: i32, %arg1: i32) -> (i32, i32, i32, i32, i32) {
    %c0_i32 = arith.constant 0 : i32
    %c0_i32_0 = arith.constant 0 : i32
    %c0_i32_1 = arith.constant 0 : i32
    %c0_i32_2 = arith.constant 0 : i32
    return %arg0, %arg1, %c0_i32, %c0_i32_0, %c0_i32_1 : i32, i32, i32, i32, i32
  }
  func.func @transform_16(%arg0: i32, %arg1: i32) -> (i32, i32, i32, i32, i32) {
    %c0_i32 = arith.constant 0 : i32
    %c0_i32_0 = arith.constant 0 : i32
    %c0_i32_1 = arith.constant 0 : i32
    %c0_i32_2 = arith.constant 0 : i32
    return %arg0, %arg1, %c0_i32, %c0_i32_0, %c0_i32_1 : i32, i32, i32, i32, i32
  }
  func.func @transform_17(%arg0: i32, %arg1: i32) -> (i32, i32, i32, i32, i32) {
    %c0_i32 = arith.constant 0 : i32
    %c0_i32_0 = arith.constant 0 : i32
    %c0_i32_1 = arith.constant 0 : i32
    %c0_i32_2 = arith.constant 0 : i32
    return %arg0, %arg1, %c0_i32, %c0_i32_0, %c0_i32_1 : i32, i32, i32, i32, i32
  }
  func.func @transform_18(%arg0: i32, %arg1: i32) -> (i32, i32, i32, i32) {
    %c0_i32 = arith.constant 0 : i32
    %c0_i32_0 = arith.constant 0 : i32
    %c0_i32_1 = arith.constant 0 : i32
    return %arg0, %arg1, %c0_i32, %c0_i32_0 : i32, i32, i32, i32
  }
}

</mosaic_0001>

<bundles_post_ra>
// kernel: tpu_custom_call.1
= control target key start
LH: loop header
LB: loop body
LE: loop exit
PB: predicated region body
PF: predicated region fallthrough
CT: control target
= control target key end

     0   :  { %s3809_s0 = inlined_call_operand.vmem [shape: f32[3,2,8,32], index: 0, kind: input, shape index: {}]   ;;  %s3810_s1 = inlined_call_operand.hbm [shape: bf16[32,32], index: 1, kind: input, shape index: {}]   ;;  %s3811_s2 = inlined_call_operand.hbm [shape: bf16[32,32], index: 2, kind: input, shape index: {}]   ;;  %s3812_s3 = inlined_call_operand.hbm [shape: bf16[32,32], index: 3, kind: input, shape index: {}]   ;;  %s3813_s4 = inlined_call_operand.vmem [shape: bf16[32,4], index: 4, kind: input, shape index: {}]   ;;  %s3814_s5 = inlined_call_operand.hbm [shape: bf16[4,8,32], index: 5, kind: input, shape index: {}]   ;;  %s3815_s6 = inlined_call_operand.hbm [shape: bf16[32,64], index: 6, kind: input, shape index: {}]   ;;  %s3816_s7 = inlined_call_operand.vmem [shape: f32[1,64], index: 7, kind: input, shape index: {}]   ;;  %s3817_s8 = inlined_call_operand.vmem [shape: bf16[64,32], index: 8, kind: input, shape index: {}]   ;;  %s3818_s9 = inlined_call_operand.vmem [shape: f32[1,32], index: 9, kind: input, shape index: {}]   ;;  %s3819_s10 = inlined_call_operand.vmem [shape: f32[1,32], index: 10, kind: input, shape index: {}]   ;;  %s3820_s11 = inlined_call_operand.vmem [shape: f32[1,32], index: 11, kind: input, shape index: {}]   ;;  %s3821_s12 = inlined_call_operand.vmem [shape: f32[1,32], index: 12, kind: input, shape index: {}]   ;;  %s3822_s13 = inlined_call_operand.vmem [shape: f32[1,32], index: 13, kind: input, shape index: {}]   ;;  %s3823_s14 = inlined_call_operand.hbm [shape: f32[3,2,8,32], index: 14, kind: output, shape index: {0}]   ;;  %s3824_s15 = inlined_call_operand.hbm [shape: f32[3,2,4,8,8], index: 15, kind: output, shape index: {1}]   ;;  %s3825_s16 = inlined_call_operand.hbm [shape: f32[3,2,4,8,8], index: 16, kind: output, shape index: {2}]   ;;  %s3826_s17 = inlined_call_operand.hbm [shape: f32[3,2,4,8,8], index: 17, kind: output, shape index: {3}]   ;;  %s3827_s18 = inlined_call_operand.hbm [shape: f32[3,2,4,8], index: 18, kind: output, shape index: {4}]  }
   0x1   :  { %3845 = sst [smem:[#allocation31_spill]] %s3809_s0 }
   0x2   :  { %3846 = sst [smem:[#allocation32_spill]] %s3810_s1 }
   0x3   :  { %3847 = sst [smem:[#allocation33_spill]] %s3811_s2 }
   0x4   :  { %3848 = sst [smem:[#allocation34_spill]] %s3812_s3 }
   0x5   :  { %3849 = sst [smem:[#allocation35_spill]] %s3813_s4 }
   0x6   :  { %3850 = sst [smem:[#allocation36_spill]] %s3814_s5 }
   0x7   :  { %3851 = sst [smem:[#allocation37_spill]] %s3815_s6 }
   0x8   :  { %3852 = sst [smem:[#allocation38_spill]] %s3821_s12 }
   0x9   :  { %3853 = sst [smem:[#allocation39_spill]] %s3822_s13 }
   0xa   :  { %3854 = sst [smem:[#allocation40_spill]] %s3823_s14 }
   0xb   :  { %3855 = sst [smem:[#allocation41_spill]] %s3825_s16 }
   0xc   :  { %3856 = sst [smem:[#allocation42_spill]] %s3826_s17 }
   0xd   :  { %3857 = sst [smem:[#allocation43_spill]] %s3827_s18 }
   0xe   :  { %24 = vsyncpa [#allocation3], 0 }
   0xf   :  { %25 = vsyncpa [#allocation6], 0 }
  0x10   :  { %26 = vsyncpa [#allocation9], 0 }
  0x11   :  { %27 = vsyncpa [#allocation4], 0 }
  0x12   :  { %29 = vsyncpa [#allocation4 + $0x1], 0 }
  0x13   :  { %30 = vsyncpa [#allocation13], 0 }
  0x14   :  { %32 = vsyncpa [#allocation13 + $0x1], 0 }
  0x15   :  { %33 = vsyncpa [#allocation16], 0 }
  0x16   :  { %35 = vsyncpa [#allocation16 + $0x1], 0  ;;  %s3223_s27 = smov 0   ;;  %s3225_s28 = smov 0  }
  0x17   :  { %s3227_s29 = smov 0   ;;  %s3229_s30 = smov 0  }
  0x18   :  { %s3231_s0 = smov 0   ;;  %s3233_s19 = smov 0  }
  0x19 LB: > { %3858 = sst [smem:[#allocation24_spill]] %s3091_s27  ;;  %s3254_s1 = sadd.s32 4294967295, %s3111_s19   ;;  %s3111_s19 = sphi %s3233_s19, %s41_s19   ;;  %s3107_s0 = sphi %s3231_s0, %s3893_s0   ;;  %s3103_s30 = sphi %s3229_s30, %s3892_s30   ;;  %s3099_s29 = sphi %s3227_s29, %s3896_s29   ;;  %s3095_s28 = sphi %s3225_s28, %s3895_s28   ;;  %s3091_s27 = sphi %s3223_s27, %s3894_s27  }
  0x1a   : > { %3859 = sst [smem:[#allocation25_spill]] %s3099_s29  ;;  %s3829_s20 = sadd.s32 4294967294, %s3111_s19  }
  0x1b   : > { %3860 = sst [smem:[#allocation26_spill]] %s3107_s0  ;;  %s53_s21 = sadd.s32 1, %s3107_s0 }
  0x1c   : > { %3861 = sst [smem:[#allocation27_spill]] %s3111_s19  ;;  %s363_s22 = sadd.s32 1, %s3099_s29 }
  0x1d   : > { %p55_p0 = scmp.ge.s32.totalorder %s53_s21, 3  ;;  %p373_p1 = scmp.ne.s32.totalorder %s3099_s29, %s3095_s28 }
  0x1e   : > { %p374_p2 = scmp.eq.s32.totalorder %s3254_s1, 2  ;;  %p379_p3 = scmp.ne.s32.totalorder %s3095_s28, %s3091_s27 }
  0x1f   : > { %s3898_s21 = smov (%p55_p0, %s53_s21), 0  ;;  %p380_p5 = scmp.eq.s32.totalorder %s3829_s20, 2 }
  0x20   : > { %3862 = sst [smem:[#allocation28_spill]] %s3898_s21  ;;  %p3266_p4 = por %p374_p2, %p373_p1 }
  0x21   : > { %s358_s23 = ssub.s32 %s3107_s0, %s3898_s21  ;;  %p2384_p6 = scmp.ge.s32.totalorder %s3111_s19, 1 }
  0x22   : > { %p361_p7 = scmp.eq.s32.totalorder %s358_s23, 0  ;;  %p3275_p8 = por %p380_p5, %p379_p3 }
  0x23   : > { %p499_p9 = scmp.lt.s32.totalorder %s3111_s19, 4  ;;  %p2593_p11 = scmp.eq.s32.totalorder %s3254_s1, 0 }
  0x24   : > { %s3864_s24 = scalar_select %p3275_p8, 1, 0 }
  0x25   : > { %s3281_s25 = scalar_select %p361_p7, %s3099_s29, %s363_s22  }
  0x26   : > { %3865 = sst [smem:[#allocation29_spill]] %s3864_s24  ;;  %p3283_p10 = pnand %p2384_p6, %p499_p9 }
  0x27   : > { %3866 = sst [smem:[#allocation30_spill]] %s3281_s25  ;;  %s3113_s22 = smov [#allocation5]  }
  0x28   : > { %p2561_p12 = pneg %p3283_p10  ;;  %s3868_s21 = sld [smem:[#allocation33_spill]] }
  0x29   : > { %s526_s25 = sshll.u32 %s3113_s22, 4  ;;  %s3870_s5 = sld [smem:[#allocation36_spill]]  ;;  %s527_s25 = int_to_ptr.vmem [resolvable:$true] %s526_s25 }
  0x2a   : > { %p3295_p13 = pnand %p2593_p11, %p2561_p12  ;;  %s3114_s18 = smov 64  }
  0x2b   : > { %s3115_s27 = smov 4   ;;  %s3116_s20 = smov [#allocation8]  }
  0x2c   : > { %s3871_s13 = sld [smem:[#allocation32_spill]]  ;;  %s3117_s29 = smov [#allocation2]  }
  0x2d   : > { %s512_s24 = sshll.u32 %s3117_s29, 4  ;;  %s3872_s3 = sld [smem:[#allocation34_spill]]  ;;  %s513_s24 = int_to_ptr.vmem [resolvable:$true] %s512_s24 }
  0x2e   : > { %s524_s0 = sshll.u32 %s3868_s21, 4  ;;  %s557_s21 = sshll.u32 %s3116_s20, 4  ;;  %s525_s0 = int_to_ptr.hbm [resolvable:$true] %s524_s0  ;;  %s558_s21 = int_to_ptr.vmem [resolvable:$true] %s557_s21 }
  0x2f   : > { %s555_s19 = sshll.u32 %s3870_s5, 4  ;;  %s3873_s6 = sld [smem:[#allocation37_spill]]  ;;  %s556_s19 = int_to_ptr.hbm [resolvable:$true] %s555_s19 }
  0x30   : > { %2567 = dma.hbm_to_vmem [thread:$0]  (!%p3295_p13), %s525_s0, 256, %s527_s25, [#allocation6], %s3114_s18, %s3114_s18, %s3115_s27  }
  0x31   : > { %2573 = dma.hbm_to_vmem [thread:$0]  (!%p3295_p13), %s556_s19, 256, %s558_s21, [#allocation9], %s3114_s18, %s3114_s18, %s3115_s27  }
  0x32   : > { %s510_s12 = sshll.u32 %s3871_s13, 4  ;;  %s3118_s14 = smov [#allocation7]   ;;  %s511_s12 = int_to_ptr.hbm [resolvable:$true] %s510_s12 }
  0x33   : > { %s538_s16 = sshll.u32 %s3872_s3, 4  ;;  %s540_s13 = sshll.u32 %s3118_s14, 4  ;;  %s539_s16 = int_to_ptr.hbm [resolvable:$true] %s538_s16  ;;  %s541_s13 = int_to_ptr.vmem [resolvable:$true] %s540_s13 }
  0x34   : > { %2564 = dma.hbm_to_vmem [thread:$0]  (!%p3295_p13), %s511_s12, 256, %s513_s24, [#allocation3], %s3114_s18, %s3114_s18, %s3115_s27  }
  0x35   : > { %s569_s20 = sshll.u32 %s3873_s6, 4  ;;  %s3119_s17 = smov [#allocation10]   ;;  %s570_s20 = int_to_ptr.hbm [resolvable:$true] %s569_s20 }
  0x36   : > { %2570 = dma.hbm_to_vmem [thread:$0]  (!%p3295_p13), %s539_s16, 256, %s541_s13, [#allocation6], %s3114_s18, %s3114_s18, %s3115_s27  }
  0x37   : > { %s571_s19 = sshll.u32 %s3119_s17, 4  ;;  %621 = sbr.rel (%p3283_p10) target bundleno = 2124 (0x84c), region = 76  ;;  %s572_s19 = int_to_ptr.vmem [resolvable:$true] %s571_s19 }
  0x38   : > { %2576 = dma.hbm_to_vmem [thread:$0]  (!%p3295_p13), %s570_s20, 256, %s572_s19, [#allocation9], %s3114_s18, %s3114_s18, %s3115_s27  }
  0x3c   : > { %3066 = dma.done.wait (%p2593_p11), [#allocation3], 256  }
  0x3d   : > { %3068 = vsyncadd (%p2593_p11), [#allocation3], 4294967040 }
  0x3e   : > { %3070 = dma.done.wait (%p2593_p11), [#allocation6], 512  }
  0x3f   : > { %3072 = vsyncadd (%p2593_p11), [#allocation6], 4294966784 }
  0x40   : > { %3074 = dma.done.wait (%p2593_p11), [#allocation9], 512  }
  0x41   : > { %3076 = vsyncadd (%p2593_p11), [#allocation9], 4294966784  ;;  %p721_p0 = scmp.lt.s32.totalorder %s3103_s30, 2  ;;  %s3874_s26 = sld [smem:[#allocation31_spill]]  ;;  %v2513_v0 = vld [vmem:[#allocation2 + $0x8] sm:$0xff]  ;;  %v2515_v1 = vld [vmem:[#allocation5 + $0x8] sm:$0xff] }
  0x42   : > { %v2512_v2 = vld [vmem:[#allocation2] sm:$0xff]  ;;  %v2514_v3 = vld [vmem:[#allocation5] sm:$0xff]  ;;  %765 = vmatpush.bf16.msra.mxu0 %v2513_v0  ;;  %795 = vmatpush.bf16.msra.mxu1 %v2515_v1  ;;  %vm755_vm0 = vcmask 261120   ;;  %vm1140_vm1 = vcmask 64512   ;;  %s3120_s27 = smov 120   ;;  %s3121_s21 = smov 112  }
  0x43   : > { %s722_s5 = scalar_select %p721_p0, %s3103_s30, 2  ;;  %v2517_v19 = vld [vmem:[#allocation7 + $0x8] sm:$0xff]  ;;  %v2516_v20 = vld [vmem:[#allocation7] sm:$0xff]  ;;  %vm1472_vm2 = vcmask 1043456   ;;  %vm1920_vm14 = vcmask 523264  }
  0x44   : > { %s3122_s29 = smov 104   ;;  %s3875_s4 = sld [smem:[#allocation35_spill]]  ;;  %825 = vmatpush.bf16.msra.mxu2 %v2517_v19 }
  0x45   : > { %s2511_s12 = sshll.u32 %s722_s5, 4  ;;  %s3378_s20 = sand.u32 1, %s3095_s28  }
  0x46   : > { %766 = vmatpush.bf16.msra.mxu0 %v2512_v2  ;;  %796 = vmatpush.bf16.msra.mxu1 %v2514_v3  ;;  %s3383_s14 = sshll.u32 %s3378_s20, 6  ;;  %s3613_s18 = sshll.u32 %s3103_s30, 6 }
  0x47   : > { %s728_s23 = scalar_lea.vmem %s3874_s26, %s2511_s12  ;;  %s3387_s13 = scalar_lea.vmem [#allocation12], %s3383_s14 }
  0x48   : > { %v3340_v4 = vld [vmem:[%s728_s23] sm:$0xff]  ;;  %v3342_v5 = vld [vmem:[%s728_s23 + $0x8] sm:$0xff]  ;;  %826 = vmatpush.bf16.msra.mxu2 %v2516_v20  ;;  %s3453_s17 = scalar_lea.vmem [#allocation14], %s3383_s14  ;;  %s2401_s12 = sshll.u32 %s3378_s20, 3 }
  0x49   : > { %v738_v6 = vpack.c.bf16 %v3342_v5, %v3340_v4  ;;  %s3580_s16 = scalar_lea.vmem [#allocation17], %s2401_s12  ;;  %s3844_s26 = sand.u32 1, %s3254_s1  }
  0x4a   : > { %v2519_v17 = vld [vmem:[%s3875_s4 + $0x8] sm:$0xff]  ;;  %v2518_v18 = vld [vmem:[%s3875_s4] sm:$0xff]  ;;  %s3876_s25 = sld [smem:[#allocation41_spill]]  ;;  %s3630_s5 = scalar_lea.sflag [#allocation13], %s3844_s26 }
  0x4b   : > { %2412 = vmatmul.msk.bf16.vlgmr.msra.gmra.mxu0 %vm755_vm0, %v738_v6  ;;  %2421 = vmatmul.msk.bf16.vlgmr.msra.gmra.mxu1 %vm755_vm0, %v738_v6 }
  0x4c   : > { %855 = vmatpush.bf16.msra.mxu3 %v2519_v17  ;;  %2430 = vmatmul.msk.bf16.vlgmr.msra.gmra.mxu2 %vm755_vm0, %v738_v6 }
  0x50   : > { %856 = vmatpush.bf16.msra.mxu3 %v2518_v18  ;;  %s2072_s19 = scalar_lea.hbm %s3876_s25, %s3613_s18 }
  0x53   : > { %2439 = vmatmul.msk.bf16.vlgmr.msra.gmra.mxu3 %vm755_vm0, %v738_v6 }
  0xc8   : > { %v768_v7 = vpop.f32.mrf.mxu0  ;;  %v798_v8 = vpop.f32.mrf.mxu1 }
  0xc9   : > { %v1149_v9 = vpack.c.bf16 %v768_v7, %v768_v7  ;;  %v1151_v10 = vpack.c.bf16 %v798_v8, %v798_v8 }
  0xcb   : > { %1170 = vrot.lane.b32.xlu2 %v1151_v10, %s3120_s27  ;;  %1172 = vrot.lane.b32.xlu0 %v1151_v10, %s3121_s21  ;;  %v1201_v11 = vsel %vm1140_vm1, %v1151_v10, 0 }
  0xcc   : > { %1158 = vrot.lane.b32.xlu1 %v1149_v9, %s3121_s21  ;;  %1210 = vmatpush.bf16.xpose.msrb.mxu0 %v1201_v11 }
  0xcf   : > { %v828_v47 = vpop.f32.mrf.mxu2 }
  0xd0   : > { %v800_v12 = vpop.f32.mrf.mxu1  ;;  %v770_v15 = vpop.f32.mrf.mxu0  ;;  %v3405_v50 = vpack.c.bf16 %v828_v47, %v828_v47 }
  0xd1   : > { %v1152_v13 = vpack.c.bf16 %v800_v12, %v800_v12  ;;  %v1150_v16 = vpack.c.bf16 %v770_v15, %v770_v15 }
  0xd2   : > { %v1474_v57 = vsel %vm1472_vm2, %v3405_v50, 0 }
  0xd3   : > { %1174 = vrot.lane.b32.xlu0 %v1151_v10, %s3122_s29  ;;  %1179 = vrot.lane.b32.xlu2 %v1152_v13, %s3121_s21  ;;  %v1277_v14 = vsel %vm1140_vm1, %v1152_v13, 0 }
  0xd4   : > { %1160 = vrot.lane.b32.xlu1 %v1149_v9, %s3122_s29  ;;  %2444 = vmatmul.msk.bf16.vlgmr.msrb.gmra.mxu0 %vm1140_vm1, %v1149_v9 }
  0xd5   : > { %1286 = vmatpush.bf16.xpose.msra.mxu0 %v1277_v14 }
  0xd6   : > { %v3403_v48 = vpop.f32.mrf.mxu3 }
  0xd7   : > { %v830_v49 = vpop.f32.mrf.mxu2 }
  0xd8   : > { %v3407_v51 = vpack.c.bf16 %v830_v49, %v830_v49 }
  0xda   : > { %v1550_v58 = vsel %vm1472_vm2, %v3407_v51, 0 }
  0xdb   : > { %1181 = vrot.lane.b32.xlu0 %v1152_v13, %s3122_s29  ;;  %1165 = vrot.lane.b32.xlu2 %v1150_v16, %s3121_s21 }
  0xdc   : > { %1156 = vrot.lane.b32.xlu1 %v1149_v9, %s3120_s27 }
  0xdd   : > { %1483 = vmatpush.bf16.msrb.mxu0 %v1474_v57 }
  0xde   : > { %v3409_v53 = vpop.f32.mrf.mxu3 }
  0xe3   : > { %1167 = vrot.lane.b32.xlu0 %v1150_v16, %s3122_s29  ;;  %1163 = vrot.lane.b32.xlu2 %v1150_v16, %s3120_s27 }
  0xe4   : > { %1177 = vrot.lane.b32.xlu1 %v1152_v13, %s3120_s27  ;;  %2448 = vmatmul.msk.bf16.vlgmr.msra.gmra.mxu0 %vm1140_vm1, %v1150_v16 }
  0xe5   : > { %1559 = vmatpush.bf16.msra.mxu0 %v1550_v58 }
 0x125   : > { %v1171_v21 = vpop.permute.xlu2 %1170 }
 0x126   : > { %v1220_v22 = vsel %vm1140_vm1, %v1171_v21, 0 }
 0x127   : > { %1229 = vmatpush.bf16.xpose.msrb.mxu1 %v1220_v22 }
 0x12d   : > { %v1180_v23 = vpop.permute.xlu2 %1179 }
 0x12e   : > { %v1315_v27 = vsel %vm1140_vm1, %v1180_v23, 0 }
 0x135   : > { %v1166_v36 = vpop.permute.xlu2 %1165 }
 0x13d   : > { %v1173_v24 = vpop.permute.xlu0 %1172  ;;  %v1164_v42 = vpop.permute.xlu2 %1163 }
 0x13e   : > { %v1159_v25 = vpop.permute.xlu1 %1158  ;;  %v1239_v26 = vsel %vm1140_vm1, %v1173_v24, 0 }
 0x13f   : > { %1248 = vmatpush.bf16.xpose.msrb.mxu2 %v1239_v26 }
 0x145   : > { %v1175_v28 = vpop.permute.xlu0 %1174 }
 0x146   : > { %v1161_v29 = vpop.permute.xlu1 %1160  ;;  %2446 = vmatmul.msk.bf16.vlgmr.msrb.gmra.mxu2 %vm1140_vm1, %v1159_v25  ;;  %v1258_v30 = vsel %vm1140_vm1, %v1175_v28, 0 }
 0x147   : > { %1324 = vmatpush.bf16.xpose.msra.mxu2 %v1315_v27  ;;  %1267 = vmatpush.bf16.xpose.msrb.mxu3 %v1258_v30 }
 0x14d   : > { %v1182_v31 = vpop.permute.xlu0 %1181 }
 0x14e   : > { %v1334_v32 = vsel %vm1140_vm1, %v1182_v31, 0  ;;  %v1157_v33 = vpop.permute.xlu1 %1156  ;;  %2447 = vmatmul.msk.bf16.vlgmr.msrb.gmra.mxu3 %vm1140_vm1, %v1161_v29 }
 0x14f   : > { %2445 = vmatmul.msk.bf16.vlgmr.msrb.gmra.mxu1 %vm1140_vm1, %v1157_v33  ;;  %1343 = vmatpush.bf16.xpose.msra.mxu3 %v1334_v32 }
 0x151   : > { %v1212_v34 = vpop.f32.mrf.mxu0 }
 0x152   : > { %v1349_v35 = vmul.f32 0.35355338, %v1212_v34 }
 0x154   : > { %1357 = vst.msk [vmem:[%s3387_s13] sm:$0xff] %vm1140_vm1, %v1349_v35  ;;  %v1365_v37 = vsel %vm1140_vm1, %v1349_v35, -inf }
 0x155   : > { %1366 = vmax.xlane.f32.xlu2 %v1365_v37  ;;  %v1168_v41 = vpop.permute.xlu0 %1167 }
 0x156   : > { %v1178_v38 = vpop.permute.xlu1 %1177  ;;  %2450 = vmatmul.msk.bf16.vlgmr.msra.gmra.mxu2 %vm1140_vm1, %v1166_v36 }
 0x157   : > { %v1296_v39 = vsel %vm1140_vm1, %v1178_v38, 0 }
 0x158   : > { %1305 = vmatpush.bf16.xpose.msra.mxu1 %v1296_v39 }
 0x159   : > { %v1214_v40 = vpop.f32.mrf.mxu0 }
 0x15e   : > { %2451 = vmatmul.msk.bf16.vlgmr.msra.gmra.mxu3 %vm1140_vm1, %v1168_v41 }
 0x15f   : > { %2449 = vmatmul.msk.bf16.vlgmr.msra.gmra.mxu1 %vm1140_vm1, %v1164_v42 }
 0x161   : > { %v1288_v43 = vpop.f32.mrf.mxu0 }
 0x162   : > { %v3396_v44 = vmul.f32 0.35355338, %v1288_v43 }
 0x164   : > { %1361 = vst.msk [vmem:[%s3387_s13 + $0x20] sm:$0xff] %vm1140_vm1, %v3396_v44  ;;  %v1377_v45 = vsel %vm1140_vm1, %v3396_v44, -inf }
 0x165   : > { %1378 = vmax.xlane.f32.xlu2 %v1377_v45 }
 0x169   : > { %v1290_v46 = vpop.f32.mrf.mxu0 }
 0x1c8   : > { %v1367_v52 = vpop.xlane.xlu2 %1366 }
 0x1c9   : > { %v1389_v54 = vsub.f32 %v1349_v35, %v1367_v52  ;;  %v1250_v55 = vpop.f32.mrf.mxu2 }
 0x1ca   : > { %v1351_v56 = vmul.f32 0.35355338, %v1250_v55 }
 0x1cb   : > { %v1397_v59 = vmul.f32 1.442695, %v1389_v54 }
 0x1cc   : > { %1359 = vst.msk [vmem:[%s3387_s13 + $0x10] sm:$0xff] %vm1140_vm1, %v1351_v56  ;;  %v1231_v60 = vpop.f32.mrf.mxu1  ;;  %v1371_v61 = vsel %vm1140_vm1, %v1351_v56, -inf }
 0x1cd   : > { %v1350_v62 = vmul.f32 0.35355338, %v1231_v60  ;;  %1372 = vmax.xlane.f32.xlu0 %v1371_v61  ;;  %2677 = vpow2.f32 %v1397_v59 }
 0x1cf   : > { %1358 = vst.msk [vmem:[%s3387_s13 + $0x8] sm:$0xff] %vm1140_vm1, %v1350_v62  ;;  %v1368_v63 = vsel %vm1140_vm1, %v1350_v62, -inf }
 0x1d0   : > { %1369 = vmax.xlane.f32.xlu2 %v1368_v63 }
 0x1d1   : > { %v1252_v0 = vpop.f32.mrf.mxu2  ;;  %v1269_v1 = vpop.f32.mrf.mxu3 }
 0x1d2   : > { %v1352_v2 = vmul.f32 0.35355338, %v1269_v1  ;;  %v2440_v1 = vmul.f32 -5.0, %v3403_v48 }
 0x1d3   : > { %v2678_v3 = vpop.eup %2677 }
 0x1d4   : > { %1360 = vst.msk [vmem:[%s3387_s13 + $0x18] sm:$0xff] %vm1140_vm1, %v1352_v2  ;;  %v1233_v6 = vpop.f32.mrf.mxu1  ;;  %v1374_v7 = vsel %vm1140_vm1, %v1352_v2, -inf  ;;  %v1413_v8 = vsel %vm1140_vm1, %v2678_v3, 0.0 }
 0x1d5   : > { %1375 = vmax.xlane.f32.xlu1 %v1374_v7 }
 0x1d8   : > { %1414 = vadd.xlane.f32.xlu2 %v1413_v8  ;;  %v1379_v22 = vpop.xlane.xlu2 %1378 }
 0x1d9   : > { %v1271_v9 = vpop.f32.mrf.mxu3  ;;  %v1326_v10 = vpop.f32.mrf.mxu2  ;;  %v1393_v52 = vsub.f32 %v3396_v44, %v1379_v22 }
 0x1da   : > { %v1355_v11 = vmul.f32 0.35355338, %v1326_v10 }
 0x1db   : > { %v1405_v55 = vmul.f32 1.442695, %v1393_v52 }
 0x1dc   : > { %1363 = vst.msk [vmem:[%s3387_s13 + $0x30] sm:$0xff] %vm1140_vm1, %v1355_v11  ;;  %v1307_v12 = vpop.f32.mrf.mxu1  ;;  %v1383_v20 = vsel %vm1140_vm1, %v1355_v11, -inf }
 0x1dd   : > { %v3427_v13 = vmul.f32 0.35355338, %v1307_v12 }
 0x1df   : > { %1362 = vst.msk [vmem:[%s3387_s13 + $0x28] sm:$0xff] %vm1140_vm1, %v3427_v13  ;;  %v1380_v14 = vsel %vm1140_vm1, %v3427_v13, -inf }
 0x1e0   : > { %1381 = vmax.xlane.f32.xlu0 %v1380_v14 }
 0x1e1   : > { %v1328_v15 = vpop.f32.mrf.mxu2  ;;  %v1345_v16 = vpop.f32.mrf.mxu3 }
 0x1e2   : > { %v1356_v17 = vmul.f32 0.35355338, %v1345_v16 }
 0x1e4   : > { %1364 = vst.msk [vmem:[%s3387_s13 + $0x38] sm:$0xff] %vm1140_vm1, %v1356_v17  ;;  %v1309_v18 = vpop.f32.mrf.mxu1  ;;  %v1386_v19 = vsel %vm1140_vm1, %v1356_v17, -inf }
 0x1e5   : > { %1387 = vmax.xlane.f32.xlu1 %v1386_v19 }
 0x1e8   : > { %1384 = vmax.xlane.f32.xlu0 %v1383_v20 }
 0x1e9   : > { %v1347_v21 = vpop.f32.mrf.mxu3 }
 0x1fc   : > { %1186 = vrot.lane.b32.xlu0 %v3405_v50, %s3121_s21 }
 0x1fe   : > { %1188 = vrot.lane.b32.xlu1 %v3405_v50, %s3122_s29 }
 0x240   : > { %v1373_v23 = vpop.xlane.xlu0 %1372 }
 0x241   : > { %v1391_v24 = vsub.f32 %v1351_v56, %v1373_v23 }
 0x243   : > { %v1401_v25 = vmul.f32 1.442695, %v1391_v24  ;;  %v1370_v26 = vpop.xlane.xlu2 %1369 }
 0x244   : > { %v1390_v27 = vsub.f32 %v1350_v62, %v1370_v26 }
 0x245   : > { %2679 = vpow2.f32 %v1401_v25 }
 0x246   : > { %v1399_v28 = vmul.f32 1.442695, %v1390_v27 }
 0x248   : > { %2681 = vpow2.f32 %v1399_v28  ;;  %v1376_v29 = vpop.xlane.xlu1 %1375 }
 0x249   : > { %v1392_v30 = vsub.f32 %v1352_v2, %v1376_v29  ;;  %v867_v2 = vmul.f32 1.442695, %v2440_v1 }
 0x24b   : > { %v3442_v31 = vpop.eup %2679  ;;  %v1403_v32 = vmul.f32 1.442695, %v1392_v30  ;;  %v1415_v33 = vpop.xlane.xlu2 %1414 }
 0x24c   : > { %2683 = vrcp.f32 %v1415_v33  ;;  %v1419_v34 = vsel %vm1140_vm1, %v3442_v31, 0.0 }
 0x24d   : > { %1420 = vadd.xlane.f32.xlu1 %v1419_v34  ;;  %2685 = vpow2.f32 %v1403_v32 }
 0x24e   : > { %v3446_v35 = vpop.eup %2681 }
 0x24f   : > { %v1416_v36 = vsel %vm1140_vm1, %v3446_v35, 0.0 }
 0x250   : > { %1417 = vadd.xlane.f32.xlu2 %v1416_v36 }
 0x252   : > { %v2684_v37 = vpop.eup %2683 }
 0x253   : > { %v1445_v38 = vmul.f32 %v2684_v37, %v2678_v3  ;;  %v1382_v39 = vpop.xlane.xlu0 %1381  ;;  %v3450_v40 = vpop.eup %2685 }
 0x254   : > { %v1422_v42 = vsel %vm1140_vm1, %v3450_v40, 0.0  ;;  %v1394_v6 = vsub.f32 %v3427_v13, %v1382_v39 }
 0x255   : > { %1453 = vst.msk [vmem:[%s3453_s17] sm:$0xff] %vm1140_vm1, %v1445_v38  ;;  %v1461_v41 = vpack.c.bf16 %v1445_v38, %v1445_v38 }
 0x256   : > { %v1407_v7 = vmul.f32 1.442695, %v1394_v6 }
 0x257   : > { %2452 = vmatmul.msk.bf16.vlgmr.msrb.gmra.mxu0 %vm1140_vm1, %v1461_v41 }
 0x258   : > { %1423 = vadd.xlane.f32.xlu2 %v1422_v42  ;;  %v1388_v43 = vpop.xlane.xlu1 %1387 }
 0x259   : > { %v1396_v45 = vsub.f32 %v1356_v17, %v1388_v43 }
 0x25b   : > { %v1411_v46 = vmul.f32 1.442695, %v1396_v45  ;;  %v1385_v47 = vpop.xlane.xlu0 %1384 }
 0x25c   : > { %v1395_v49 = vsub.f32 %v1355_v11, %v1385_v47 }
 0x25d   : > { %2687 = vpow2.f32 %v1411_v46 }
 0x25e   : > { %v1409_v54 = vmul.f32 1.442695, %v1395_v49 }
 0x260   : > { %2689 = vpow2.f32 %v1409_v54 }
 0x261   : > { %2691 = vpow2.f32 %v1405_v55 }
 0x262   : > { %2693 = vpow2.f32 %v867_v2 }
 0x263   : > { %v3461_v56 = vpop.eup %2687 }
 0x264   : > { %v1434_v57 = vsel %vm1140_vm1, %v3461_v56, 0.0 }
 0x265   : > { %1435 = vadd.xlane.f32.xlu1 %v1434_v57 }
 0x266   : > { %v3465_v58 = vpop.eup %2689 }
 0x267   : > { %v1431_v59 = vsel %vm1140_vm1, %v3465_v58, 0.0  ;;  %v3469_v60 = vpop.eup %2691 }
 0x268   : > { %1432 = vadd.xlane.f32.xlu0 %v1431_v59  ;;  %v1425_v62 = vsel %vm1140_vm1, %v3469_v60, 0.0  ;;  %v2694_v3 = vpop.eup %2693 }
 0x26e   : > { %v1187_v61 = vpop.permute.xlu0 %1186 }
 0x26f   : > { %v1512_v44 = vsel %vm1472_vm2, %v1187_v61, 0 }
 0x270   : > { %1521 = vmatpush.bf16.msrb.mxu2 %v1512_v44  ;;  %1426 = vadd.xlane.f32.xlu0 %v1425_v62  ;;  %v1189_v63 = vpop.permute.xlu1 %1188  ;;  %v1622_v62 = vld [vmem:[#allocation8] sm:$0xf] }
 0x271   : > { %1184 = vrot.lane.b32.xlu2 %v3405_v50, %s3120_s27  ;;  %v1531_v0 = vsel %vm1472_vm2, %v1189_v63, 0  ;;  %v871_v50 = vadd.f32 1.0, %v2694_v3  ;;  %v1657_v63 = vsel %vm1472_vm2, %v1622_v62, 0  ;;  %v1624_v3 = vld [vmem:[#allocation8 + $0x8] sm:$0xf] }
 0x272   : > { %1540 = vmatpush.bf16.msrb.mxu3 %v1531_v0  ;;  %v1676_v6 = vsel %vm1472_vm2, %v1624_v3, 0 }
 0x273   : > { %2695 = vrcp.f32 %v871_v50  ;;  %vm878_vm3 = vweird.f32 %v871_v50  ;;  %v884_v48 = vand.u32 2147483648, %v871_v50  ;;  %v882_v15 = vand.u32 2147483647, %v871_v50 }
 0x274   : > { %2697 = vpow2.f32 %v1407_v7 }
 0x275   : > { %v885_v13 = vor.u32 1.1754944e-38, %v884_v48  ;;  %vm883_vm6 = vcmp.eq.f32.partialorder %v882_v15, 8.507059e+37 }
 0x279   : > { %1193 = vrot.lane.b32.xlu2 %v3407_v51, %s3121_s21  ;;  %v2696_v8 = vpop.eup %2695  ;;  %s2052_s21 = scalar_lea.hbm %s3824_s15, %s3613_s18 }
 0x27a   : > { %v3485_v9 = vpop.eup %2697  ;;  %v874_v10 = vmul.f32 %v2696_v8, %v871_v50  ;;  %vm879_vm4 = vweird.f32 %v2696_v8  ;;  %v1623_v50 = vld [vmem:[#allocation8 + $0x4] sm:$0xf]  ;;  %s2055_s24 = sshll.u32 %s2052_s21, 4  ;;  %s2056_s24 = int_to_ptr.hbm [resolvable:$true] %s2055_s24 }
 0x27b   : > { %v1428_v11 = vsel %vm1140_vm1, %v3485_v9, 0.0  ;;  %vm880_vm5 = vmor %vm878_vm3, %vm879_vm4  ;;  %v1638_v7 = vsel %vm1472_vm2, %v1623_v50, 0  ;;  %s2915_s12 = sshra.s32 %s2056_s24, 4  ;;  %s2916_s12 = int_to_ptr.hbm [resolvable:$true] %s2915_s12 }
 0x27c   : > { %1647 = vmatpush.bf16.msrb.mxu0 %v1638_v7  ;;  %s2917_s3 = scalar_lea.hbm %s2916_s12, 64  ;;  %p2922_p5 = scmp.lt.s32.totalorder %s2916_s12, %s3824_s15 }
 0x27d   : > { %p2918_p1 = scmp.ne.s32.totalorder %s2916_s12, %s2917_s3 }
 0x27e   : > { %1191 = vrot.lane.b32.xlu1 %v3407_v51, %s3120_s27  ;;  %s2921_s27 = scalar_lea.hbm %s3824_s15, 192 }
 0x27f   : > { %p2919_p2 = pnand %p2918_p1, %p3266_p4  ;;  %p2923_p6 = scmp.lt.s32.totalorder %s2921_s27, %s2917_s3 }
 0x281   : > { %1195 = vrot.lane.b32.xlu2 %v3407_v51, %s3122_s29  ;;  %v875_v51 = vsub.f32 1.0, %v874_v10  ;;  %s2053_s29 = sshll.u32 %s3387_s13, 4  ;;  %p2920_p3 = pneg %p2919_p2  ;;  %s2054_s29 = int_to_ptr.vmem [resolvable:$true] %s2053_s29 }
 0x282   : > { %p2924_p7 = por %p2923_p6, %p2922_p5 }
 0x283   : > { %v876_v12 = vmul.f32 %v2696_v8, %v875_v51 }
 0x284   : > { %p2925_p9 = pnand %p2924_p7, %p2920_p3 }
 0x285   : > { %v877_v14 = vadd.f32 %v2696_v8, %v876_v12 }
 0x287   : > { %v881_v16 = vsel %vm880_vm5, %v2696_v8, %v877_v14  ;;  %vm977_vm5 = vcmask 60416  }
 0x288   : > { %v886_v17 = vsel %vm883_vm6, %v885_v13, %v881_v16 }
 0x289   : > { %v903_v18 = vadd.f32 1e-05, %v886_v17 }
 0x28b   : > { %v905_v20 = vmul.f32 1.0986123, %v903_v18 }
 0x28d   : > { %v907_v22 = vmul.f32 1.442695, %v905_v20 }
 0x2aa   : > { %1429 = vadd.xlane.f32.xlu2 %v1428_v11 }
 0x2c0   : > { %v1421_v19 = vpop.xlane.xlu1 %1420 }
 0x2c1   : > { %2699 = vrcp.f32 %v1421_v19 }
 0x2c3   : > { %v1418_v21 = vpop.xlane.xlu2 %1417 }
 0x2c4   : > { %2701 = vrcp.f32 %v1418_v21 }
 0x2c5   : > { %2703 = vpow2.f32 %v907_v22 }
 0x2c7   : > { %v2700_v23 = vpop.eup %2699 }
 0x2c8   : > { %v1447_v24 = vmul.f32 %v2700_v23, %v3442_v31 }
 0x2ca   : > { %v2702_v25 = vpop.eup %2701  ;;  %1455 = vst.msk [vmem:[%s3453_s17 + $0x10] sm:$0xff] %vm1140_vm1, %v1447_v24  ;;  %v1463_v26 = vpack.c.bf16 %v1447_v24, %v1447_v24 }
 0x2cb   : > { %v1446_v27 = vmul.f32 %v2702_v25, %v3446_v35  ;;  %v1424_v28 = vpop.xlane.xlu2 %1423  ;;  %v2704_v29 = vpop.eup %2703 }
 0x2cc   : > { %2705 = vrcp.f32 %v1424_v28  ;;  %2454 = vmatmul.msk.bf16.vlgmr.msrb.gmra.mxu2 %vm1140_vm1, %v1463_v26  ;;  %v2442_v30 = vadd.f32 -1.0, %v2704_v29 }
 0x2cd   : > { %1454 = vst.msk [vmem:[%s3453_s17 + $0x8] sm:$0xff] %vm1140_vm1, %v1446_v27  ;;  %v1462_v35 = vpack.c.bf16 %v1446_v27, %v1446_v27 }
 0x2d2   : > { %v2706_v32 = vpop.eup %2705 }
 0x2d3   : > { %v1448_v33 = vmul.f32 %v2706_v32, %v3450_v40  ;;  %913 = vxpose.xlu2.b32.start.end [1/1] (short) (narrow) %v2442_v30, 8  ;;  %v1185_v31 = vpop.permute.xlu2 %1184 }
 0x2d4   : > { %v1493_v34 = vsel %vm1472_vm2, %v1185_v31, 0  ;;  %v1485_v36 = vpop.f32.mrf.mxu0 }
 0x2d5   : > { %1456 = vst.msk [vmem:[%s3453_s17 + $0x18] sm:$0xff] %vm1140_vm1, %v1448_v33  ;;  %v1464_v37 = vpack.c.bf16 %v1448_v33, %v1448_v33  ;;  %1502 = vmatpush.bf16.msrb.mxu1 %v1493_v34  ;;  %v1626_v8 = vpack.c.bf16 %v1485_v36, %v1485_v36 }
 0x2d7   : > { %2455 = vmatmul.msk.bf16.vlgmr.msrb.gmra.mxu3 %vm1140_vm1, %v1464_v37 }
 0x2d8   : > { %2453 = vmatmul.msk.bf16.vlgmr.msrb.gmra.mxu1 %vm1140_vm1, %v1462_v35  ;;  %v1436_v38 = vpop.xlane.xlu1 %1435 }
 0x2d9   : > { %2707 = vrcp.f32 %v1436_v38 }
 0x2db   : > { %v1433_v39 = vpop.xlane.xlu0 %1432  ;;  %v1194_v40 = vpop.permute.xlu2 %1193 }
 0x2dc   : > { %2709 = vrcp.f32 %v1433_v39  ;;  %v1588_v41 = vsel %vm1472_vm2, %v1194_v40, 0  ;;  %v1487_v42 = vpop.f32.mrf.mxu0 }
 0x2dd   : > { %1597 = vmatpush.bf16.msra.mxu2 %v1588_v41 }
 0x2df   : > { %v2708_v43 = vpop.eup %2707 }
 0x2e0   : > { %v1452_v45 = vmul.f32 %v2708_v43, %v3461_v56 }
 0x2e1   : > { %1685 = vmatpush.bf16.msrb.mxu2 %v1676_v6 }
 0x2e2   : > { %v2710_v46 = vpop.eup %2709  ;;  %1460 = vst.msk [vmem:[%s3453_s17 + $0x38] sm:$0xff] %vm1140_vm1, %v1452_v45  ;;  %v1468_v57 = vpack.c.bf16 %v1452_v45, %v1452_v45 }
 0x2e3   : > { %v1451_v47 = vmul.f32 %v2710_v46, %v3465_v58  ;;  %v1427_v49 = vpop.xlane.xlu0 %1426  ;;  %v1196_v52 = vpop.permute.xlu2 %1195 }
 0x2e4   : > { %2711 = vrcp.f32 %v1427_v49  ;;  %v1607_v54 = vsel %vm1472_vm2, %v1196_v52, 0 }
 0x2e5   : > { %1459 = vst.msk [vmem:[%s3453_s17 + $0x30] sm:$0xff] %vm1140_vm1, %v1451_v47  ;;  %v1467_v55 = vpack.c.bf16 %v1451_v47, %v1451_v47  ;;  %1616 = vmatpush.bf16.msra.mxu3 %v1607_v54 }
 0x2e7   : > { %2458 = vmatmul.msk.bf16.vlgmr.msra.gmra.mxu2 %vm1140_vm1, %v1467_v55 }
 0x2e8   : > { %2459 = vmatmul.msk.bf16.vlgmr.msra.gmra.mxu3 %vm1140_vm1, %v1468_v57  ;;  %1754 = vmatpush.bf16.msra.mxu2 %v1676_v6 }
 0x2ea   : > { %v2712_v56 = vpop.eup %2711 }
 0x2eb   : > { %v1449_v59 = vmul.f32 %v2712_v56, %v3469_v60 }
 0x2ed   : > { %1457 = vst.msk [vmem:[%s3453_s17 + $0x20] sm:$0xff] %vm1140_vm1, %v1449_v59  ;;  %v1465_v58 = vpack.c.bf16 %v1449_v59, %v1449_v59 }
 0x2ef   : > { %2456 = vmatmul.msk.bf16.vlgmr.msra.gmra.mxu0 %vm1140_vm1, %v1465_v58 }
 0x2f0   : > { %v1192_v61 = vpop.permute.xlu1 %1191  ;;  %1722 = vmatpush.bf16.msra.mxu0 %v1638_v7 }
 0x2f1   : > { %v1569_v44 = vsel %vm1472_vm2, %v1192_v61, 0 }
 0x2f2   : > { %1578 = vmatpush.bf16.msra.mxu1 %v1569_v44 }
 0x2f6   : > { %1666 = vmatpush.bf16.msrb.mxu1 %v1657_v63 }
 0x31d   : > { %v1430_v0 = vpop.xlane.xlu2 %1429 }
 0x31e   : > { %2713 = vrcp.f32 %v1430_v0 }
 0x324   : > { %v2714_v1 = vpop.eup %2713 }
 0x325   : > { %v1450_v2 = vmul.f32 %v2714_v1, %v3485_v9  ;;  %v1625_v9 = vld [vmem:[#allocation8 + $0xc] sm:$0xf] }
 0x326   : > { %v1696_v10 = vsel %vm1472_vm2, %v1625_v9, 0 }
 0x327   : > { %1458 = vst.msk [vmem:[%s3453_s17 + $0x28] sm:$0xff] %vm1140_vm1, %v1450_v2  ;;  %v1466_v60 = vpack.c.bf16 %v1450_v2, %v1450_v2  ;;  %1705 = vmatpush.bf16.msrb.mxu3 %v1696_v10 }
 0x329   : > { %2457 = vmatmul.msk.bf16.vlgmr.msra.gmra.mxu1 %vm1140_vm1, %v1466_v60 }
 0x32a   : > { %1738 = vmatpush.bf16.msra.mxu1 %v1657_v63 }
 0x32b   : > { %1771 = vmatpush.bf16.msra.mxu3 %v1696_v10 }
 0x339   : > { %2461 = vmatmul.msk.bf16.vlgmr.msrb.gmra.mxu1 %vm1140_vm1, %v1626_v8 }
 0x34f   : > { %v1523_v11 = vpop.f32.mrf.mxu2 }
 0x350   : > { %v1628_v51 = vpack.c.bf16 %v1523_v11, %v1523_v11 }
 0x352   : > { %2462 = vmatmul.msk.bf16.vlgmr.msrb.gmra.mxu2 %vm1140_vm1, %v1628_v51 }
 0x355   : > { %v1504_v12 = vpop.f32.mrf.mxu1 }
 0x356   : > { %v1627_v48 = vpack.c.bf16 %v1504_v12, %v1504_v12 }
 0x357   : > { %v1525_v14 = vpop.f32.mrf.mxu2 }
 0x358   : > { %2460 = vmatmul.msk.bf16.vlgmr.msrb.gmra.mxu0 %vm1140_vm1, %v1627_v48  ;;  %v2521_v14 = vld [vmem:[#allocation10 + $0x8] sm:$0xff] }
 0x359   : > { %1873 = vmatpush.bf16.msrb.mxu0 %v2521_v14 }
 0x35a   : > { %v1542_v15 = vpop.f32.mrf.mxu3 }
 0x35b   : > { %v1629_v13 = vpack.c.bf16 %v1542_v15, %v1542_v15 }
 0x35d   : > { %v1506_v16 = vpop.f32.mrf.mxu1  ;;  %2463 = vmatmul.msk.bf16.vlgmr.msrb.gmra.mxu3 %vm1140_vm1, %v1629_v13  ;;  %v2520_v13 = vld [vmem:[#allocation10] sm:$0xff] }
 0x35e   : > { %1874 = vmatpush.bf16.msrb.mxu0 %v2520_v13 }
 0x362   : > { %v1544_v17 = vpop.f32.mrf.mxu3 }
 0x36a   : > { %v1599_v18 = vpop.f32.mrf.mxu2 }
 0x36b   : > { %v1632_v19 = vpack.c.bf16 %v1599_v18, %v1599_v18  ;;  %v1618_v20 = vpop.f32.mrf.mxu3 }
 0x36c   : > { %v1633_v21 = vpack.c.bf16 %v1618_v20, %v1618_v20  ;;  %v1561_v22 = vpop.f32.mrf.mxu0 }
 0x36d   : > { %v1630_v23 = vpack.c.bf16 %v1561_v22, %v1561_v22  ;;  %2466 = vmatmul.msk.bf16.vlgmr.msra.gmra.mxu2 %vm1140_vm1, %v1632_v19 }
 0x36e   : > { %2467 = vmatmul.msk.bf16.vlgmr.msra.gmra.mxu3 %vm1140_vm1, %v1633_v21 }
 0x36f   : > { %2465 = vmatmul.msk.bf16.vlgmr.msra.gmra.mxu1 %vm1140_vm1, %v1630_v23 }
 0x372   : > { %v1601_v24 = vpop.f32.mrf.mxu2 }
 0x373   : > { %v1620_v25 = vpop.f32.mrf.mxu3 }
 0x374   : > { %v1563_v26 = vpop.f32.mrf.mxu0 }
 0x3a6   : > { %v1580_v27 = vpop.f32.mrf.mxu1 }
 0x3a7   : > { %v1631_v28 = vpack.c.bf16 %v1580_v27, %v1580_v27 }
 0x3a9   : > { %2464 = vmatmul.msk.bf16.vlgmr.msra.gmra.mxu0 %vm1140_vm1, %v1631_v28 }
 0x3ae   : > { %v1582_v29 = vpop.f32.mrf.mxu1 }
 0x3b6   : > { %v1668_v30 = vpop.f32.mrf.mxu1 }
 0x3be   : > { %v1670_v32 = vpop.f32.mrf.mxu1 }
 0x3d5   : > { %v1649_v33 = vpop.f32.mrf.mxu0  ;;  %v1687_v31 = vpop.f32.mrf.mxu2 }
 0x3d6   : > { %v1669_v34 = vadd.f32 %v1668_v30, %v1649_v33  ;;  %v2671_v30 = vld [vmem:[%s3819_s10] ss:$0 sm:$0xff] }
 0x3d8   : > { %v1691_v35 = vadd.f32 %v1687_v31, %v1669_v34  ;;  %v2672_v34 = vld [vmem:[%s3820_s11] ss:$0 sm:$0xff] }
 0x3dd   : > { %v1651_v36 = vpop.f32.mrf.mxu0  ;;  %v1689_v37 = vpop.f32.mrf.mxu2 }
 0x3e0   : > { %v1707_v38 = vpop.f32.mrf.mxu3 }
 0x3e1   : > { %v1711_v39 = vadd.f32 %v1707_v38, %v1691_v35 }
 0x3e3   : > { %v1778_v40 = vadd.f32 %v1711_v39, %v3340_v4  ;;  %v3123_v4 = vmov 32.0  }
 0x3e4   : > { %2715 = vrcp.f32 %v3123_v4 }
 0x3e5   : > { %v1782_v41 = vsel %vm755_vm0, %v1778_v40, 0.0 }
 0x3e6   : > { %1783 = vadd.xlane.f32.xlu0 %v1782_v41  ;;  %v2525_v41 = vld [vmem:[%s3817_s8 + $0x18] sm:$0xff] }
 0x3e7   : > { %1928 = vmatpush.bf16.msrb.mxu1 %v2525_v41 }
 0x3e8   : > { %v1709_v42 = vpop.f32.mrf.mxu3 }
 0x3e9   : > { %v2524_v42 = vld [vmem:[%s3817_s8 + $0x10] sm:$0xff] }
 0x3ea   : > { %v2716_v44 = vpop.eup %2715 }
 0x3eb   : > { %v1789_v62 = vmul.f32 32.0, %v2716_v44  ;;  %vm1793_vm7 = vweird.f32 %v2716_v44  ;;  %1929 = vmatpush.bf16.msrb.mxu1 %v2524_v42 }
 0x3ec   : > { %v1740_v43 = vpop.f32.mrf.mxu1 }
 0x3ed   : > { %v1790_v63 = vsub.f32 1.0, %v1789_v62 }
 0x3ef   : > { %v1791_v0 = vmul.f32 %v2716_v44, %v1790_v63 }
 0x3f0   : > { %v1756_v45 = vpop.f32.mrf.mxu2 }
 0x3f1   : > { %v1773_v46 = vpop.f32.mrf.mxu3  ;;  %v1792_v1 = vadd.f32 %v2716_v44, %v1791_v0 }
 0x3f3   : > { %v3537_v2 = vsel %vm1793_vm7, %v2716_v44, %v1792_v1  ;;  %v2674_v44 = vld [vmem:[%s3818_s9] ss:$0 sm:$0xff] }
 0x3f4   : > { %v1742_v47 = vpop.f32.mrf.mxu1 }
 0x3f5   : > { %v2673_v47 = vld [vmem:[%s3816_s7] ss:$0 sm:$0xff] }
 0x3f8   : > { %v1758_v49 = vpop.f32.mrf.mxu2 }
 0x3f9   : > { %v1775_v52 = vpop.f32.mrf.mxu3 }
 0x426   : > { %v1724_v54 = vpop.f32.mrf.mxu0 }
 0x427   : > { %v1741_v55 = vadd.f32 %v1740_v43, %v1724_v54  ;;  %v2523_v43 = vld [vmem:[%s3817_s8 + $0x8] sm:$0xff] }
 0x428   : > { %1930 = vmatpush.bf16.msrb.mxu1 %v2523_v43 }
 0x429   : > { %v1760_v57 = vadd.f32 %v1756_v45, %v1741_v55  ;;  %v2522_v45 = vld [vmem:[%s3817_s8] sm:$0xff] }
 0x42b   : > { %v1777_v56 = vadd.f32 %v1773_v46, %v1760_v57 }
 0x42c   : > { %1931 = vmatpush.bf16.msrb.mxu1 %v2522_v45 }
 0x42d   : > { %v1779_v59 = vadd.f32 %v1777_v56, %v3342_v5 }
 0x42e   : > { %v1726_v58 = vpop.f32.mrf.mxu0 }
 0x42f   : > { %v1785_v61 = vsel %vm755_vm0, %v1779_v59, 0.0 }
 0x430   : > { %1786 = vadd.xlane.f32.xlu0 %v1785_v61 }
 0x459   : > { %v1784_v60 = vpop.xlane.xlu0 %1783 }
 0x45a   : > { %v1795_v3 = vmul.f32 %v3537_v2, %v1784_v60 }
 0x45c   : > { %v1797_v6 = vsub.f32 %v1778_v40, %v1795_v3 }
 0x45e   : > { %v1799_v50 = vmul.f32 %v1797_v6, %v1797_v6 }
 0x460   : > { %v1801_v5 = vsel %vm755_vm0, %v1799_v50, 0.0 }
 0x461   : > { %1802 = vadd.xlane.f32.xlu0 %v1801_v5 }
 0x4a3   : > { %v1787_v7 = vpop.xlane.xlu0 %1786 }
 0x4a4   : > { %v1796_v8 = vmul.f32 %v3537_v2, %v1787_v7 }
 0x4a6   : > { %v1798_v9 = vsub.f32 %v1779_v59, %v1796_v8  ;;  %v2441_v59 = vmul.f32 -5.0, %v3409_v53 }
 0x4a8   : > { %v1800_v10 = vmul.f32 %v1798_v9, %v1798_v9  ;;  %v869_v58 = vmul.f32 1.442695, %v2441_v59 }
 0x4aa   : > { %v1804_v11 = vsel %vm755_vm0, %v1800_v10, 0.0 }
 0x4ab   : > { %1805 = vadd.xlane.f32.xlu1 %v1804_v11 }
 0x4d4   : > { %v1803_v51 = vpop.xlane.xlu0 %1802 }
 0x4d5   : > { %v1807_v12 = vmul.f32 %v1803_v51, %v3537_v2 }
 0x4d7   : > { %v1809_v48 = vadd.f32 1e-05, %v1807_v12 }
 0x4d9   : > { %2717 = vrsqrt.f32 %v1809_v48  ;;  %vm1817_vm9 = vweird.f32 %v1809_v48 }
 0x4df   : > { %v2718_v15 = vpop.eup %2717 }
 0x4e0   : > { %v1812_v16 = vmul.f32 %v2718_v15, %v1809_v48  ;;  %vm1818_vm8 = vweird.f32 %v2718_v15 }
 0x4e1   : > { %vm1819_vm10 = vmor %vm1817_vm9, %vm1818_vm8 }
 0x4e2   : > { %v1813_v17 = vmul.f32 %v2718_v15, %v1812_v16 }
 0x4e4   : > { %v1814_v21 = vmul.f32 0.5, %v1813_v17 }
 0x4e6   : > { %v1815_v22 = vsub.f32 1.5, %v1814_v21 }
 0x4e8   : > { %v1816_v24 = vmul.f32 %v2718_v15, %v1815_v22 }
 0x4ea   : > { %v1820_v27 = vsel %vm1819_vm10, %v2718_v15, %v1816_v24 }
 0x4eb   : > { %v1831_v32 = vmul.f32 %v1820_v27, %v1797_v6 }
 0x4ed   : > { %v1836_v36 = vmul.f32 %v2671_v30, %v1831_v32 }
 0x4ef   : > { %v1841_v38 = vadd.f32 %v2672_v34, %v1836_v36 }
 0x51e   : > { %v1806_v18 = vpop.xlane.xlu1 %1805 }
 0x51f   : > { %v1808_v19 = vmul.f32 %v1806_v18, %v3537_v2  ;;  %v929_v18 = vpop.trf.xlu2 }
 0x520   : > { %978 = vst.msk [vmem:[%s3580_s16] sm:$0xf] %vm977_vm5, %v929_v18 }
 0x521   : > { %v1810_v20 = vadd.f32 1e-05, %v1808_v19  ;;  %v980_v19 = vlaneseq }
 0x523   : > { %2719 = vrsqrt.f32 %v1810_v20  ;;  %vm1827_vm12 = vweird.f32 %v1810_v20  ;;  %v983_v21 = vand.u32 127, %v980_v19 }
 0x524   : > { %2721 = vpow2.f32 %v869_v58 }
 0x529   : > { %v2720_v23 = vpop.eup %2719 }
 0x52a   : > { %v1822_v25 = vmul.f32 %v2720_v23, %v1810_v20  ;;  %vm1828_vm11 = vweird.f32 %v2720_v23  ;;  %v2722_v61 = vpop.eup %2721  ;;  %v981_v20 = vshrl.u32 %v980_v19, 7 }
 0x52b   : > { %vm1829_vm13 = vmor %vm1827_vm12, %vm1828_vm11  ;;  %v872_v4 = vadd.f32 1.0, %v2722_v61 }
 0x52c   : > { %v1823_v26 = vmul.f32 %v2720_v23, %v1822_v25  ;;  %2669 = vset.pattern.permute.xlu1 %v981_v20  ;;  %v984_v22 = vsub.s32 %v981_v20, %v983_v21  ;;  %2668 = vset.pattern.permute.xlu2 %v981_v20 }
 0x52d   : > { %2723 = vrcp.f32 %v872_v4  ;;  %vm893_vm15 = vweird.f32 %v872_v4  ;;  %v897_v11 = vand.u32 2147483647, %v872_v4 }
 0x52e   : > { %v1824_v28 = vmul.f32 0.5, %v1823_v26 }
 0x52f   : > { %vm898_vm4 = vcmp.eq.f32.partialorder %v897_v11, 8.507059e+37 }
 0x530   : > { %v1825_v29 = vsub.f32 1.5, %v1824_v28 }
 0x532   : > { %v1826_v33 = vmul.f32 %v2720_v23, %v1825_v29 }
 0x533   : > { %v2724_v60 = vpop.eup %2723 }
 0x534   : > { %v1830_v31 = vsel %vm1829_vm13, %v2720_v23, %v1826_v33  ;;  %v889_v6 = vmul.f32 %v2724_v60, %v872_v4  ;;  %vm894_vm2 = vweird.f32 %v2724_v60 }
 0x535   : > { %v1832_v37 = vmul.f32 %v1830_v31, %v1798_v9  ;;  %v899_v9 = vand.u32 2147483648, %v872_v4  ;;  %vm895_vm3 = vmor %vm893_vm15, %vm894_vm2 }
 0x536   : > { %v890_v7 = vsub.f32 1.0, %v889_v6 }
 0x537   : > { %v1837_v35 = vmul.f32 %v2671_v30, %v1832_v37  ;;  %v900_v51 = vor.u32 1.1754944e-38, %v899_v9 }
 0x538   : > { %v891_v8 = vmul.f32 %v2724_v60, %v890_v7 }
 0x539   : > { %v1842_v39 = vadd.f32 %v2672_v34, %v1837_v35 }
 0x53a   : > { %v892_v10 = vadd.f32 %v2724_v60, %v891_v8 }
 0x53b   : > { %v1843_v40 = vpack.c.bf16 %v1842_v39, %v1841_v38 }
 0x53c   : > { %v896_v12 = vsel %vm895_vm3, %v2724_v60, %v892_v10 }
 0x53d   : > { %2476 = vmatmul.msk.bf16.vlgmr.msrb.gmra.mxu0 %vm755_vm0, %v1843_v40  ;;  %v901_v48 = vsel %vm898_vm4, %v900_v51, %v896_v12 }
 0x53e   : > { %v904_v14 = vadd.f32 1e-05, %v901_v48 }
 0x540   : > { %v906_v15 = vmul.f32 1.0986123, %v904_v14 }
 0x542   : > { %v909_v13 = vmul.f32 1.442695, %v906_v15 }
 0x544   : > { %2725 = vpow2.f32 %v909_v13 }
 0x545   : > { %2727 = vrcp.f32 %v929_v18 }
 0x54a   : > { %v2726_v16 = vpop.eup %2725 }
 0x54b   : > { %v2443_v17 = vadd.f32 -1.0, %v2726_v16  ;;  %v2728_v23 = vpop.eup %2727 }
 0x54c   : > { %v989_v24 = vmul.f32 0.5, %v2728_v23  ;;  %v993_v43 = vmul.f32 0.3989423, %v2728_v23 }
 0x54e   : > { %v991_v25 = vmul.f32 %v2728_v23, %v989_v24  ;;  %v995_v45 = vperm.slane %v993_v43, 0 }
 0x550   : > { %v1059_v26 = vperm.slane %v991_v25, 1  ;;  %v1052_v27 = vperm.slane %v991_v25, 0  ;;  %v1073_v28 = vperm.slane %v991_v25, 3  ;;  %v1066_v29 = vperm.slane %v991_v25, 2 }
 0x552   : > { %1064 = vperm.xlu1 %2669, %v1059_v26   ;;  %1057 = vperm.xlu2 %2668, %v1052_v27  }
 0x55a   : > { %1078 = vperm.xlu1 %2669, %v1073_v28  }
 0x5ac   : > { %v1058_v6 = vpop.permute.xlu2 %1057 }
 0x5ba   : > { %v1876_v46 = vpop.f32.mrf.mxu0 }
 0x5bb   : > { %v1877_v49 = vadd.f32 %v2673_v47, %v1876_v46  ;;  %v1002_v46 = vperm.slane %v993_v43, 1 }
 0x5bd   : > { %v1881_v55 = vmax.f32 %v1877_v49, 0.0  ;;  %v1016_v49 = vperm.slane %v993_v43, 3 }
 0x5c2   : > { %v1878_v52 = vpop.f32.mrf.mxu0 }
 0x5c3   : > { %v1879_v54 = vadd.f32 %v2673_v47, %v1878_v52  ;;  %v1009_v47 = vperm.slane %v993_v43, 2 }
 0x5c5   : > { %v1882_v57 = vmax.f32 %v1879_v54, 0.0 }
 0x5c7   : > { %v1883_v56 = vpack.c.bf16 %v1882_v57, %v1881_v55  ;;  %v1065_v55 = vpop.permute.xlu1 %1064 }
 0x5c9   : > { %2493 = vmatmul.msk.bf16.vlgmr.msrb.gmra.mxu1 %vm1920_vm14, %v1883_v56 }
 0x5cf   : > { %v3602_v4 = vpop.permute.xlu1 %1078 }
 0x646   : > { %v1933_v62 = vpop.f32.mrf.mxu1 }
 0x647   : > { %v1934_v63 = vadd.f32 %v2674_v44, %v1933_v62  ;;  %v985_v62 = vcvt.s32.f32 %v984_v22 }
 0x649   : > { %v3571_v0 = vadd.f32 %v1934_v63, %v1841_v38 }
 0x64b   : > { %v1942_v1 = vsel %vm755_vm0, %v3571_v0, 0.0 }
 0x64c   : > { %1943 = vadd.xlane.f32.xlu0 %v1942_v1  ;;  %v986_v1 = vmul.f32 %v985_v62, %v985_v62 }
 0x64e   : > { %v1935_v3 = vpop.f32.mrf.mxu1  ;;  %v3609_v60 = vsub.f32 0.0, %v986_v1 }
 0x64f   : > { %v1936_v53 = vadd.f32 %v2674_v44, %v1935_v3 }
 0x650   : > { %v1108_v7 = vmul.f32 %v1058_v6, %v3609_v60 }
 0x651   : > { %v3575_v50 = vadd.f32 %v1936_v53, %v1842_v39 }
 0x653   : > { %v1945_v5 = vsel %vm755_vm0, %v3575_v50, 0.0 }
 0x654   : > { %1946 = vadd.xlane.f32.xlu0 %v1945_v5 }
 0x67d   : > { %945 = vxpose.xlu0.b32.start.end [1/1] (short) (narrow) %v2443_v17, 8 }
 0x6bf   : > { %v1944_v30 = vpop.xlane.xlu0 %1943 }
 0x6c0   : > { %v1948_v54 = vmul.f32 %v1944_v30, %v3537_v2 }
 0x6c2   : > { %v3593_v57 = vsub.f32 %v3571_v0, %v1948_v54 }
 0x6c4   : > { %v1952_v59 = vmul.f32 %v3593_v57, %v3593_v57 }
 0x6c6   : > { %v1954_v61 = vsel %vm755_vm0, %v1952_v59, 0.0 }
 0x6c7   : > { %v1947_v32 = vpop.xlane.xlu0 %1946 }
 0x6c8   : > { %v1949_v56 = vmul.f32 %v1947_v32, %v3537_v2 }
 0x6ca   : > { %v3599_v58 = vsub.f32 %v3575_v50, %v1949_v56 }
 0x6cc   : > { %v1953_v44 = vmul.f32 %v3599_v58, %v3599_v58 }
 0x6ce   : > { %v1957_v63 = vsel %vm755_vm0, %v1953_v44, 0.0 }
 0x6e4   : > { %2670 = vset.pattern.permute.xlu0 %v981_v20 }
 0x6ec   : > { %1071 = vperm.xlu0 %2670, %v1066_v29  }
 0x721   : > { %v961_v33 = vpop.trf.xlu0 }
 0x722   : > { %979 = vst.msk [vmem:[%s3580_s16 + $0x4] sm:$0xf] %vm977_vm5, %v961_v33  ;;  %2729 = vrcp.f32 %v961_v33 }
 0x728   : > { %v2730_v31 = vpop.eup %2729 }
 0x729   : > { %v3586_v34 = vmul.f32 0.3989423, %v2730_v31  ;;  %v990_v36 = vmul.f32 0.5, %v2730_v31 }
 0x72b   : > { %v1030_v37 = vperm.slane %v3586_v34, 1  ;;  %v992_v35 = vmul.f32 %v2730_v31, %v990_v36  ;;  %v1044_v39 = vperm.slane %v3586_v34, 3  ;;  %v1023_v52 = vperm.slane %v3586_v34, 0 }
 0x72d   : > { %1035 = vperm.xlu2 %2668, %v1030_v37   ;;  %v1080_v38 = vperm.slane %v992_v35, 0  ;;  %v1087_v40 = vperm.slane %v992_v35, 1  ;;  %v1094_v41 = vperm.slane %v992_v35, 2  ;;  %v1101_v42 = vperm.slane %v992_v35, 3 }
 0x72f   : > { %1085 = vperm.xlu1 %2669, %v1080_v38  }
 0x735   : > { %1049 = vperm.xlu2 %2668, %v1044_v39  }
 0x737   : > { %1092 = vperm.xlu1 %2669, %v1087_v40  }
 0x73f   : > { %1099 = vperm.xlu1 %2669, %v1094_v41  }
 0x747   : > { %1106 = vperm.xlu1 %2669, %v1101_v42  }
 0x74f   : > { %1000 = vperm.xlu1 %2669, %v995_v45  }
 0x757   : > { %1007 = vperm.xlu1 %2669, %v1002_v46  }
 0x75f   : > { %1014 = vperm.xlu1 %2669, %v1009_v47  }
 0x767   : > { %1021 = vperm.xlu1 %2669, %v1016_v49  }
 0x76f   : > { %1028 = vperm.xlu1 %2669, %v1023_v52  }
 0x787   : > { %v1036_v9 = vpop.permute.xlu2 %1035 }
 0x799   : > { %1955 = vadd.xlane.f32.xlu1 %v1954_v61 }
 0x7a1   : > { %1958 = vadd.xlane.f32.xlu1 %v1957_v63  ;;  %v3607_v0 = vpop.permute.xlu1 %1085 }
 0x7a9   : > { %v1093_v3 = vpop.permute.xlu1 %1092 }
 0x7aa   : > { %v1113_v53 = vmul.f32 %v1093_v3, %v3609_v60 }
 0x7ac   : > { %v1126_v50 = vmul.f32 1.442695, %v1113_v53 }
 0x7ae   : > { %2731 = vpow2.f32 %v1126_v50 }
 0x7b1   : > { %v3616_v5 = vpop.permute.xlu1 %1099 }
 0x7b4   : > { %v2732_v8 = vpop.eup %2731 }
 0x7b5   : > { %2928 = shalt.err (!%p2925_p9)
}
 0x7b6   : > { %s3840_s22 = smov 128   ;;  %s3842_s0 = smov 8   ;;  %v1137_v10 = vmul.f32 %v2732_v8, %v1036_v9  ;;  %v1116_v11 = vmul.f32 1.442695, %v1108_v7  ;;  %v1037_v51 = vperm.slane %v3586_v34, 2  ;;  %v1109_v14 = vmul.f32 %v1065_v55, %v3609_v60 }
 0x7b7   : > { %2552 = dma.vmem_to_hbm [thread:$0]  (%p3266_p4), %s2054_s29, 1024, %s2056_s24, %s3630_s5, %s3840_s22, %s3840_s22, %s3842_s0  }
 0x7b8   : > { %s2073_s13 = sshll.u32 %s3453_s17, 4  ;;  %s3648_s4 = scalar_lea.vmem [#allocation15], %s3383_s14  ;;  %2733 = vpow2.f32 %v1116_v11  ;;  %s2074_s13 = int_to_ptr.vmem [resolvable:$true] %s2073_s13 }
 0x7b9   : > { %1146 = vst.msk [vmem:[%s3648_s4 + $0x28] sm:$0xff] %vm1140_vm1, %v1137_v10  ;;  %s2075_s3 = sshll.u32 %s2072_s19, 4  ;;  %v1107_v12 = vpop.permute.xlu1 %1106  ;;  %s2949_s19 = scalar_lea.hbm %s3876_s25, 192  ;;  %s2076_s3 = int_to_ptr.hbm [resolvable:$true] %s2075_s3 }
 0x7ba   : > { %v1115_v48 = vmul.f32 %v1107_v12, %v3609_v60  ;;  %1042 = vperm.xlu1 %2669, %v1037_v51   ;;  %s2943_s17 = sshra.s32 %s2076_s3, 4  ;;  %s2944_s17 = int_to_ptr.hbm [resolvable:$true] %s2943_s17 }
 0x7bb   : > { %s2945_s14 = scalar_lea.hbm %s2944_s17, 64  ;;  %p2950_p13 = scmp.lt.s32.totalorder %s2944_s17, %s3876_s25 }
 0x7bc   : > { %v1130_v15 = vmul.f32 1.442695, %v1115_v48  ;;  %p2946_p10 = scmp.ne.s32.totalorder %s2944_s17, %s2945_s14  ;;  %p2951_p0 = scmp.lt.s32.totalorder %s2949_s19, %s2945_s14 }
 0x7be   : > { %p2947_p11 = pnand %p2946_p10, %p3266_p4  ;;  %p2952_p1 = por %p2951_p0, %p2950_p13 }
 0x7c0   : > { %p2948_p12 = pneg %p2947_p11 }
 0x7c2   : > { %p2953_p2 = pnand %p2952_p1, %p2948_p12 }
 0x7c4   : > { %2956 = shalt.err (!%p2953_p2)
}
 0x7c5   : > { %2553 = dma.vmem_to_hbm [thread:$0]  (%p3266_p4), %s2074_s13, 1024, %s2076_s3, %s3630_s5, %s3840_s22, %s3840_s22, %s3842_s0   ;;  %2735 = vpow2.f32 %v1130_v15  ;;  %v1118_v13 = vmul.f32 1.442695, %v1109_v14  ;;  %v1072_v16 = vpop.permute.xlu0 %1071  ;;  %v2734_v17 = vpop.eup %2733  ;;  %v1111_v28 = vmul.f32 %v3602_v4, %v3609_v60  ;;  %v1112_v31 = vmul.f32 %v3607_v0, %v3609_v60 }
 0x7c6   : > { %v1001_v18 = vpop.permute.xlu1 %1000  ;;  %v1110_v20 = vmul.f32 %v1072_v16, %v3609_v60  ;;  %v1050_v22 = vpop.permute.xlu2 %1049  ;;  %v1114_v56 = vmul.f32 %v3616_v5, %v3609_v60  ;;  %s3877_s21 = sld [smem:[#allocation38_spill]]  ;;  %s2397_s13 = sshll.u32 %s3378_s20, 4 }
 0x7c7   : > { %v1132_v19 = vmul.f32 %v2734_v17, %v1001_v18  ;;  %2737 = vpow2.f32 %v1118_v13  ;;  %v1122_v29 = vmul.f32 1.442695, %v1111_v28  ;;  %v1124_v34 = vmul.f32 1.442695, %v1112_v31  ;;  %s3878_s14 = sld [smem:[#allocation39_spill]]  ;;  %s2112_s29 = sshll.u32 %s3580_s16, 4  ;;  %s3705_s29 = int_to_ptr.vmem [resolvable:$true] %s2112_s29 }
 0x7c8   : > { %v1120_v24 = vmul.f32 1.442695, %v1110_v20  ;;  %v1128_v62 = vmul.f32 1.442695, %v1114_v56  ;;  %s2526_s24 = sshll.u32 %s3103_s30, 4  ;;  %s3879_s23 = sld [smem:[#allocation42_spill]] }
 0x7c9   : > { %1141 = vst.msk [vmem:[%s3648_s4] sm:$0xff] %vm1140_vm1, %v1132_v19  ;;  %s2530_s27 = sshll.u32 %s3103_s30, 3  ;;  %s3880_s16 = sld [smem:[#allocation40_spill]] }
 0x7ca   : > { %2739 = vpow2.f32 %v1120_v24  ;;  %s3713_s0 = scalar_lea.vmem [#allocation11], %s2397_s13  ;;  %s3881_s19 = sld [smem:[#allocation43_spill]] }
 0x7cb   : > { %v2736_v21 = vpop.eup %2735  ;;  %2741 = vpow2.f32 %v1122_v29  ;;  %s2033_s6 = sshll.u32 %s3713_s0, 4  ;;  %s3725_s6 = int_to_ptr.vmem [resolvable:$true] %s2033_s6 }
 0x7cc   : > { %v1139_v23 = vmul.f32 %v2736_v21, %v1050_v22  ;;  %2743 = vpow2.f32 %v1124_v34 }
 0x7cd   : > { %v2738_v25 = vpop.eup %2737  ;;  %v2676_v1 = vld [vmem:[%s3878_s14] ss:$0 sm:$0xff] }
 0x7ce   : > { %1148 = vst.msk [vmem:[%s3648_s4 + $0x38] sm:$0xff] %vm1140_vm1, %v1139_v23  ;;  %v1008_v26 = vpop.permute.xlu1 %1007  ;;  %s2092_s5 = scalar_lea.hbm %s3879_s23, %s3613_s18  ;;  %s2977_s30 = scalar_lea.hbm %s3879_s23, 192 }
 0x7cf   : > { %v1133_v27 = vmul.f32 %v2738_v25, %v1008_v26  ;;  %s2032_s14 = scalar_lea.hbm %s3880_s16, %s2526_s24  ;;  %s3711_s22 = sshll.u32 %s2092_s5, 4  ;;  %s2096_s22 = int_to_ptr.hbm [resolvable:$true] %s3711_s22 }
 0x7d0   : > { %v2740_v30 = vpop.eup %2739  ;;  %s3882_s12 = smov %s3881_s19  ;;  %s2111_s26 = scalar_lea.hbm %s3881_s19, %s2530_s27 }
 0x7d1   : > { %1142 = vst.msk [vmem:[%s3648_s4 + $0x8] sm:$0xff] %vm1140_vm1, %v1133_v27  ;;  %v2742_v36 = vpop.eup %2741  ;;  %s2035_s24 = sshll.u32 %s2032_s14, 4  ;;  %s2114_s13 = sshll.u32 %s2111_s26, 4  ;;  %s3727_s24 = int_to_ptr.hbm [resolvable:$true] %s2035_s24  ;;  %s3731_s13 = int_to_ptr.hbm [resolvable:$true] %s2114_s13 }
 0x7d2   : > { %v2744_v38 = vpop.eup %2743  ;;  %s3883_s5 = sand.u32 1, %s3254_s1   ;;  %s2971_s3 = sshra.s32 %s2096_s22, 4  ;;  %s2972_s3 = int_to_ptr.hbm [resolvable:$true] %s2971_s3 }
 0x7d3   : > { %s3735_s27 = scalar_lea.sflag [#allocation16], %s3883_s5  ;;  %s2973_s17 = scalar_lea.hbm %s2972_s3, 64 }
 0x7d4   : > { %p2974_p3 = scmp.ne.s32.totalorder %s2972_s3, %s2973_s17  ;;  %p2978_p7 = scmp.lt.s32.totalorder %s2972_s3, %s3879_s23 }
 0x7d5   : > { %p2979_p9 = scmp.lt.s32.totalorder %s2977_s30, %s2973_s17 }
 0x7d6   : > { %v1015_v32 = vpop.permute.xlu1 %1014  ;;  %p2975_p5 = pnand %p2974_p3, %p3266_p4 }
 0x7d7   : > { %v1134_v33 = vmul.f32 %v2740_v30, %v1015_v32  ;;  %p2980_p10 = por %p2979_p9, %p2978_p7 }
 0x7d8   : > { %p2976_p6 = pneg %p2975_p5 }
 0x7d9   : > { %1143 = vst.msk [vmem:[%s3648_s4 + $0x10] sm:$0xff] %vm1140_vm1, %v1134_v33 }
 0x7da   : > { %p2981_p11 = pnand %p2980_p10, %p2976_p6 }
 0x7de   : > { %v1022_v37 = vpop.permute.xlu1 %1021 }
 0x7df   : > { %v1135_v35 = vmul.f32 %v2742_v36, %v1022_v37 }
 0x7e1   : > { %1144 = vst.msk [vmem:[%s3648_s4 + $0x18] sm:$0xff] %vm1140_vm1, %v1135_v35 }
 0x7e6   : > { %v1029_v39 = vpop.permute.xlu1 %1028 }
 0x7e7   : > { %v1136_v40 = vmul.f32 %v2744_v38, %v1029_v39 }
 0x7e9   : > { %1145 = vst.msk [vmem:[%s3648_s4 + $0x20] sm:$0xff] %vm1140_vm1, %v1136_v40 }
 0x80c   : > { %v1956_v41 = vpop.xlane.xlu1 %1955 }
 0x80d   : > { %v1960_v42 = vmul.f32 %v1956_v41, %v3537_v2 }
 0x80f   : > { %v1962_v43 = vadd.f32 1e-05, %v1960_v42 }
 0x811   : > { %2745 = vrsqrt.f32 %v1962_v43  ;;  %vm1970_vm7 = vweird.f32 %v1962_v43 }
 0x814   : > { %v1959_v45 = vpop.xlane.xlu1 %1958 }
 0x815   : > { %v1961_v46 = vmul.f32 %v1959_v45, %v3537_v2  ;;  %v2675_v2 = vld [vmem:[%s3877_s21] ss:$0 sm:$0xff]  ;;  %s2093_s21 = sshll.u32 %s3648_s4, 4  ;;  %s3722_s21 = int_to_ptr.vmem [resolvable:$true] %s2093_s21 }
 0x817   : > { %v2746_v47 = vpop.eup %2745  ;;  %v1963_v49 = vadd.f32 1e-05, %v1961_v46 }
 0x818   : > { %v1965_v52 = vmul.f32 %v2746_v47, %v1962_v43  ;;  %vm1971_vm6 = vweird.f32 %v2746_v47 }
 0x819   : > { %2747 = vrsqrt.f32 %v1963_v49  ;;  %vm1972_vm8 = vmor %vm1970_vm7, %vm1971_vm6  ;;  %vm1980_vm10 = vweird.f32 %v1963_v49 }
 0x81a   : > { %v1966_v54 = vmul.f32 %v2746_v47, %v1965_v52  ;;  %2749 = vpow2.f32 %v1128_v62 }
 0x81c   : > { %v1967_v55 = vmul.f32 0.5, %v1966_v54 }
 0x81e   : > { %v1968_v59 = vsub.f32 1.5, %v1967_v55 }
 0x81f   : > { %v2748_v61 = vpop.eup %2747 }
 0x820   : > { %v1969_v4 = vmul.f32 %v2746_v47, %v1968_v59  ;;  %v1975_v44 = vmul.f32 %v2748_v61, %v1963_v49  ;;  %vm1981_vm9 = vweird.f32 %v2748_v61  ;;  %v2750_v8 = vpop.eup %2749 }
 0x821   : > { %vm1982_vm11 = vmor %vm1980_vm10, %vm1981_vm9 }
 0x822   : > { %v1973_v63 = vsel %vm1972_vm8, %v2746_v47, %v1969_v4  ;;  %v1976_v0 = vmul.f32 %v2748_v61, %v1975_v44 }
 0x823   : > { %v1984_v60 = vmul.f32 %v1973_v63, %v3593_v57 }
 0x824   : > { %v1977_v3 = vmul.f32 0.5, %v1976_v0 }
 0x825   : > { %v1989_v53 = vmul.f32 %v2675_v2, %v1984_v60 }
 0x826   : > { %v1978_v6 = vsub.f32 1.5, %v1977_v3 }
 0x827   : > { %v1994_v50 = vadd.f32 %v2676_v1, %v1989_v53 }
 0x828   : > { %v1979_v5 = vmul.f32 %v2748_v61, %v1978_v6 }
 0x829   : > { %1996 = vst.msk [vmem:[%s3713_s0] sm:$0xff] %vm755_vm0, %v1994_v50 }
 0x82a   : > { %v1983_v57 = vsel %vm1982_vm11, %v2748_v61, %v1979_v5 }
 0x82b   : > { %v1985_v7 = vmul.f32 %v1983_v57, %v3599_v58 }
 0x82c   : > { %v1043_v9 = vpop.permute.xlu1 %1042 }
 0x82d   : > { %v1990_v10 = vmul.f32 %v2675_v2, %v1985_v7  ;;  %v1138_v11 = vmul.f32 %v2750_v8, %v1043_v9 }
 0x82f   : > { %v1995_v51 = vadd.f32 %v2676_v1, %v1990_v10  ;;  %1147 = vst.msk [vmem:[%s3648_s4 + $0x30] sm:$0xff] %vm1140_vm1, %v1138_v11 }
 0x830   : > { %2984 = shalt.err (!%p2981_p11)
}
 0x831   : > { %s3884_s1 = smov 8   ;;  %s3885_s4 = smov 128   ;;  %1997 = vst.msk [vmem:[%s3713_s0 + $0x8] sm:$0xff] %vm755_vm0, %v1995_v51 }
 0x832   : > { %2554 = dma.vmem_to_hbm [thread:$0]  (%p3266_p4), %s3722_s21, 1024, %s2096_s22, %s3735_s27, %s3885_s4, %s3885_s4, %s3884_s1  }
 0x833   : > { %s1999_s5 = scalar_lea.sflag [#allocation4], %s3378_s20  ;;  %s2999_s3 = sshra.s32 %s3727_s24, 4  ;;  %s3000_s3 = int_to_ptr.hbm [resolvable:$true] %s2999_s3 }
 0x834   : > { %s3001_s17 = scalar_lea.hbm %s3000_s3, 16  ;;  %s3005_s30 = scalar_lea.hbm %s3880_s16, 48 }
 0x835   : > { %p3002_p12 = scmp.ne.s32.totalorder %s3000_s3, %s3001_s17  ;;  %p3006_p1 = scmp.lt.s32.totalorder %s3000_s3, %s3880_s16 }
 0x836   : > { %p3007_p2 = scmp.lt.s32.totalorder %s3005_s30, %s3001_s17 }
 0x837   : > { %p3003_p13 = pnand %p3002_p12, %p3266_p4 }
 0x838   : > { %p3008_p3 = por %p3007_p2, %p3006_p1 }
 0x839   : > { %p3004_p0 = pneg %p3003_p13 }
 0x83b   : > { %p3009_p5 = pnand %p3008_p3, %p3004_p0 }
 0x83d   : > { %3012 = shalt.err (!%p3009_p5)
}
 0x83e   : > { %2551 = dma.vmem_to_hbm [thread:$0]  (%p3266_p4), %s3725_s6, 256, %s3727_s24, %s1999_s5, %s3885_s4, %s3885_s4, %s3884_s1  }
 0x83f   : > { %s3027_s20 = sshra.s32 %s3731_s13, 4  ;;  %s3033_s3 = scalar_lea.hbm %s3882_s12, 24  ;;  %s3028_s20 = int_to_ptr.hbm [resolvable:$true] %s3027_s20 }
 0x840   : > { %s3029_s22 = scalar_lea.hbm %s3028_s20, 8  ;;  %p3034_p10 = scmp.lt.s32.totalorder %s3028_s20, %s3882_s12 }
 0x841   : > { %p3030_p6 = scmp.ne.s32.totalorder %s3028_s20, %s3029_s22  ;;  %p3035_p11 = scmp.lt.s32.totalorder %s3033_s3, %s3029_s22 }
 0x843   : > { %p3031_p7 = pnand %p3030_p6, %p3266_p4  ;;  %p3036_p12 = por %p3035_p11, %p3034_p10 }
 0x845   : > { %p3032_p9 = pneg %p3031_p7 }
 0x847   : > { %p3037_p13 = pnand %p3036_p12, %p3032_p9 }
 0x849   : > { %3040 = shalt.err (!%p3037_p13)
}
 0x84a   : > { %s3126_s6 = smov 64   ;;  %s3127_s24 = smov 4  }
 0x84b   : > { %2555 = dma.vmem_to_hbm [thread:$0]  (%p3266_p4), %s3705_s29, 128, %s3731_s13, %s3735_s27, %s3126_s6, %s3126_s6, %s3127_s24  }
 0x84c PF: > { %s3886_s1 = sld [smem:[#allocation27_spill]] }
 0x84d   : > { %s3887_s4 = sld [smem:[#allocation24_spill]] }
 0x852   : > { %p2603_p0 = scmp.ge.s32.totalorder %s3886_s1, 2 }
 0x853   : > { %s2129_s14 = sand.u32 1, %s3887_s4  }
 0x854   : > { %p2578_p1 = pnand %p2603_p0, %p3275_p8  ;;  %s2130_s30 = scalar_lea.sflag [#allocation4], %s2129_s14 }
 0x856   : > { %p2579_p2 = pneg %p2578_p1 }
 0x858   : > { %3078 = dma.done.wait (%p2579_p2), %s2130_s30, 256  }
 0x859   : > { %3080 = vsyncadd (%p2579_p2), %s2130_s30, 4294967040  ;;  %s3889_s18 = sadd.s32 4294967294, %s3886_s1  }
 0x85a   : > { %s2139_s19 = sand.u32 1, %s3889_s18  }
 0x85b   : > { %s2140_s20 = scalar_lea.sflag [#allocation13], %s2139_s19 }
 0x85c   : > { %3082 = dma.done.wait (%p2579_p2), %s2140_s20, 2048  }
 0x85d   : > { %3084 = vsyncadd (%p2579_p2), %s2140_s20, 4294965248  ;;  %s2160_s2 = scalar_lea.sflag [#allocation16], %s2139_s19 }
 0x85e   : > { %3086 = dma.done.wait (%p2579_p2), %s2160_s2, 1152  }
 0x85f   : > { %3088 = vsyncadd (%p2579_p2), %s2160_s2, 4294966144  ;;  %s41_s19 = sadd.s32 1, %s3886_s1   ;;  %s3890_s29 = sld [smem:[#allocation25_spill]] }
 0x860   : > { %p38_p4 = scmp.ge.s32.totalorder %s41_s19, 5   ;;  %s3891_s13 = sld [smem:[#allocation30_spill]] }
 0x861   : > { %s3892_s30 = sld [smem:[#allocation26_spill]]  ;;  %s3894_s27 = smov %s3095_s28 }
 0x862   : > { %s3893_s0 = sld [smem:[#allocation28_spill]]  ;;  %40 = sbr.rel (!%p38_p4) target bundleno = 25 (0x19), region = 196 }
 0x865   : > { %s3895_s28 = smov %s3890_s29 }
 0x866   : > { %s3896_s29 = smov %s3891_s13 }
 0x867   :  { %2176 = vsyncpa [#allocation3], 1 }
 0x868   :  { %2178 = vsyncpa [#allocation3 + $0x1], 1 }
 0x869   :  { %2179 = vsyncpa [#allocation6], 1 }
 0x86a   :  { %2180 = vsyncpa [#allocation9], 1 }
 0x86b   :  { %2181 = vsyncpa [#allocation4], 1 }
 0x86c   :  { %2183 = vsyncpa [#allocation4 + $0x1], 1 }
 0x86d   :  { %2184 = vsyncpa [#allocation13], 1 }
 0x86e   :  { %2186 = vsyncpa [#allocation13 + $0x1], 1 }
 0x86f   :  { %2187 = vsyncpa [#allocation16], 1 }
 0x870   :  { %2189 = vsyncpa [#allocation16 + $0x1], 1 }

</bundles_post_ra>
